<compile_context>
chip_gen: v5e
topology: v5e:2x2
jax: 0.10.0
libtpu: 0.0.40
codegen_flags: <defaults>
</compile_context>

<pallas_src>
import jax
import jax.numpy as jnp
from jax.experimental import pallas as pl
from jax.experimental.pallas import tpu as pltpu


# ---------------------------------------------------------------------------
# Pallas kernel: all flow layers for one lane-tile of rows (transposed layout).
# ---------------------------------------------------------------------------
def _coupling_flow_kernel(x_ref, t_ref,
                          w1k_ref, w1t_ref, b1_ref,   # (L,H,KMAX) mm | (L,H,1) f32 | (L,H,1) f32
                          w2t_ref, b2_ref,            # (L,H,H)   mm | (L,H,1) f32
                          w3s_ref, b3s_ref,           # (L,NT,H)  mm | (L,NT,1) f32   scale head
                          w3t_ref, b3t_ref,           # (L,NT,H)  mm | (L,NT,1) f32   shift head
                          tws_ref, twt_ref,           # (L,NT,1) f32 | (L,NT,1) f32   TimeTanh
                          o_ref):                     # (D, TILE)
    d, tn = x_ref.shape
    n_layers = w1k_ref.shape[0]
    kmax = w1k_ref.shape[-1]
    hl = d // 2
    mm_dtype = w2t_ref.dtype                       # bf16 fast path or f32

    t_row = t_ref[...].astype(jnp.float32)         # (1, TN), hoisted out of the layer loop
    x = x_ref[...].astype(jnp.float32)             # (D, TN)

    if d == 1:
        xs = x
    else:
        x_lo = x[:hl, :]                           # first-half rows
        x_hi = x[hl:, :]                           # second-half rows

    for l in range(n_layers):                      # static unroll over flow layers
        # ---- latent MLP: h^T = tanh(W2^T tanh(W1^T [x*mask, t]^T + b1) + b2) ----
        if d == 1:
            # mask 'none': x contributes nothing to the MLP input.
            h = w1t_ref[l] * t_row + b1_ref[l]
        else:
            # stribor ordered masks: even layer keeps first half, odd keeps second.
            x_kept = x_lo if l % 2 == 0 else x_hi
            xk = x_kept.astype(mm_dtype)
            kw = xk.shape[0]
            if kw < kmax:                          # odd D: pad to packed weight width
                xk = jnp.concatenate(
                    [xk, jnp.zeros((kmax - kw, tn), mm_dtype)], axis=0)
            h = (jnp.dot(w1k_ref[l], xk, preferred_element_type=jnp.float32)
                 + w1t_ref[l] * t_row + b1_ref[l])
        h = jnp.tanh(h)
        h = jnp.tanh(jnp.dot(w2t_ref[l], h.astype(mm_dtype),
                             preferred_element_type=jnp.float32) + b2_ref[l])
        hq = h.astype(mm_dtype)

        # ---- heads: scale / shift kept as separate aligned tensors (no sublane split) ----
        scale = jnp.dot(w3s_ref[l], hq, preferred_element_type=jnp.float32) + b3s_ref[l]
        shift = jnp.dot(w3t_ref[l], hq, preferred_element_type=jnp.float32) + b3t_ref[l]
        t_scale = jnp.tanh(tws_ref[l] * t_row)     # (NT, TN)
        t_shift = jnp.tanh(twt_ref[l] * t_row)

        gain = jnp.exp(scale * t_scale)
        off = shift * t_shift

        # ---- in-place affine update of the transformed half only (no concat per layer) ----
        if d == 1:
            xs = xs * gain + off
        elif l % 2 == 0:                           # even layer transforms the second half
            x_hi = x_hi * gain + off
        else:                                      # odd layer transforms the first half
            x_lo = x_lo * gain[:hl, :] + off[:hl, :]

    if d == 1:
        y = xs
    else:
        y = jnp.concatenate([x_lo, x_hi], axis=0)  # single merge at the very end
    o_ref[...] = y.astype(o_ref.dtype)             # lane-dense store, width = TILE


# ---------------------------------------------------------------------------
# One-time parameter packing (hoisted out of the per-call path).
#   Per layer, with the mask parity baked in:
#     w1k : (L, H, KMAX)  transposed W1 restricted to that layer's KEPT columns
#     w1t : (L, H, 1)     W1 time row,  b1 : (L, H, 1)
#     w2t : (L, H, H)     W2 transposed, b2 : (L, H, 1)
#     w3s/w3t : (L, NT, H) scale/shift heads restricted to the TRANSFORMED cols
#     b3s/b3t, tws/twt : (L, NT, 1)
#   Matmul weights are stored in bf16 (f32 accumulate) unless use_bf16_matmul=False.
# ---------------------------------------------------------------------------
def pack_params(params, dim, *, use_bf16_matmul=True):
    (w1, b1, w2, b2, w3s, b3s, w3t, b3t, tws, twt) = params
    L = w1.shape[0]
    H = w2.shape[-1]
    hl, hh = dim // 2, dim - dim // 2
    kmax = max(hh, 1)
    ntmax = hh if dim > 1 else 1
    mm_dtype = jnp.bfloat16 if use_bf16_matmul else jnp.float32

    w1k = jnp.zeros((L, H, kmax), jnp.float32)
    w3s_t = jnp.zeros((L, ntmax, H), jnp.float32)
    w3t_t = jnp.zeros((L, ntmax, H), jnp.float32)
    b3s_t = jnp.zeros((L, ntmax, 1), jnp.float32)
    b3t_t = jnp.zeros((L, ntmax, 1), jnp.float32)
    tws_t = jnp.zeros((L, ntmax, 1), jnp.float32)
    twt_t = jnp.zeros((L, ntmax, 1), jnp.float32)

    for l in range(L):
        if dim == 1:
            tcols = slice(0, 1)                    # everything transformed
        else:
            if l % 2 == 0:
                kcols, tcols = slice(0, hl), slice(hl, dim)
            else:
                kcols, tcols = slice(hl, dim), slice(0, hl)
            kw = kcols.stop - kcols.start
            w1k = w1k.at[l, :, :kw].set(w1[l, kcols, :].T)
        nt = tcols.stop - tcols.start
        w3s_t = w3s_t.at[l, :nt, :].set(w3s[l, :, tcols].T)
        w3t_t = w3t_t.at[l, :nt, :].set(w3t[l, :, tcols].T)
        b3s_t = b3s_t.at[l, :nt, 0].set(b3s[l, 0, tcols])
        b3t_t = b3t_t.at[l, :nt, 0].set(b3t[l, 0, tcols])
        tws_t = tws_t.at[l, :nt, 0].set(tws[l, 0, tcols])
        twt_t = twt_t.at[l, :nt, 0].set(twt[l, 0, tcols])

    return {
        "w1k": w1k.astype(mm_dtype),
        "w1t": w1[:, dim, :].reshape(L, H, 1).astype(jnp.float32),
        "b1": jnp.transpose(b1, (0, 2, 1)).astype(jnp.float32),
        "w2t": jnp.transpose(w2, (0, 2, 1)).astype(mm_dtype),
        "b2": jnp.transpose(b2, (0, 2, 1)).astype(jnp.float32),
        "w3s": w3s_t.astype(mm_dtype), "b3s": b3s_t,
        "w3t": w3t_t.astype(mm_dtype), "b3t": b3t_t,
        "tws": tws_t, "twt": twt_t,
    }


def _round_up(n, m):
    return ((n + m - 1) // m) * m


# ---------------------------------------------------------------------------
# Wrapper: transpose to the lane-dense layout, pad, pallas_call, transpose back.
# ---------------------------------------------------------------------------
def coupling_flow_forward(x, t, packed, *, row_tile=2048):
    """x: (B, S, D) or (B, 1, D); t: (B, S, 1); packed: dict from pack_params."""
    B, S, _ = t.shape
    if x.shape[-2] == 1:
        # TODO(synk): feed the un-repeated (B,1,D) x via a per-batch index_map instead of
        # materializing the S-fold repeat in HBM.
        x = jnp.repeat(x, S, axis=-2)
    # TODO(synk): t0 inverse path (self.flow.inverse) not implemented; forward assumes t0=None.
    D = x.shape[-1]
    N = B * S

    weights = (packed["w1k"], packed["w1t"], packed["b1"],
               packed["w2t"], packed["b2"],
               packed["w3s"], packed["b3s"], packed["w3t"], packed["b3t"],
               packed["tws"], packed["twt"])

    # Lane tile (rows ride the lane axis): multiple of 128, large to amortize per-step
    # overhead, but capped so the grid has >=2 steps (v7x megacore) when N allows.
    target = _round_up(max(pl.cdiv(N, 2), 1), 128)
    tile = _round_up(max(128, min(row_tile, target)), 128)
    Np = _round_up(N, tile)

    # Transposed, lane-dense layout: (D, Np) and (1, Np); zero rows are harmless
    # (exp(0)=1, shift*0=0) and sliced off afterwards.
    xT = jnp.pad(x.reshape(N, D).T, ((0, 0), (0, Np - N)))
    tT = jnp.pad(t.reshape(N, 1).T, ((0, 0), (0, Np - N)))

    # Generation-aware VMEM budget (v7x: 64 MiB/TC vs 128 MiB on v5e/v6e).
    try:
        vmem_cap = int(pltpu.get_tpu_info().vmem_capacity_bytes)
    except Exception:
        vmem_cap = 64 * 1024 * 1024
    w_bytes = sum(int(a.size) * a.dtype.itemsize for a in weights)
    io_bytes = (2 * D + 1) * tile * 4
    need = 2 * w_bytes + 2 * io_bytes + (16 << 20)       # weights + dbl-buffered I/O + headroom
    vmem_limit = int(min(max(need, 16 << 20), vmem_cap * 3 // 4))

    grid = (Np // tile,)
    out_shape = jax.ShapeDtypeStruct((D, Np), x.dtype)
    x_spec = pl.BlockSpec((D, tile), lambda i: (0, i))
    t_spec = pl.BlockSpec((1, tile), lambda i: (0, i))
    o_spec = pl.BlockSpec((D, tile), lambda i: (0, i))

    def run(single_buffer_weights):
        def w_spec(a):
            idx = lambda i, _nd=a.ndim: (0,) * _nd       # constant: weights stay VMEM-resident
            if single_buffer_weights:
                return pl.BlockSpec(a.shape, idx, pipeline_mode=pl.Buffered(1))
            return pl.BlockSpec(a.shape, idx)
        return pl.pallas_call(
            _coupling_flow_kernel,
            out_shape=out_shape,
            grid=grid,
            in_specs=[x_spec, t_spec] + [w_spec(a) for a in weights],
            out_specs=o_spec,
            compiler_params=pltpu.CompilerParams(
                dimension_semantics=("parallel",),
                vmem_limit_bytes=vmem_limit,
            ),
        )(xT, tT, *weights)

    try:
        out = run(True)                 # single-buffered (grid-invariant) weights
    except Exception:
        out = run(False)                # fallback: default double-buffered weights

    return out[:, :N].T.reshape(B, S, D)


# ---------------------------------------------------------------------------
# Pure-JAX reference (uses the ORIGINAL unpacked params, so it also cross-checks
# the wrapper-side packing / mask-parity / transposition).
# ---------------------------------------------------------------------------
def coupling_flow_reference(x, t, params):
    (w1, b1, w2, b2, w3s, b3s, w3t, b3t, tws, twt) = params
    B, S, _ = t.shape
    if x.shape[-2] == 1:
        x = jnp.repeat(x, S, axis=-2)
    D = x.shape[-1]
    L = w1.shape[0]
    idx = jnp.arange(D)
    for l in range(L):
        if D == 1:
            mask = jnp.zeros((D,), x.dtype)
        elif l % 2 == 0:
            mask = (idx < D // 2).astype(x.dtype)
        else:
            mask = (idx >= D // 2).astype(x.dtype)
        h = jnp.tanh((x * mask) @ w1[l, :D, :] + t * w1[l, D:D + 1, :] + b1[l])
        h = jnp.tanh(h @ w2[l] + b2[l])
        scale = h @ w3s[l] + b3s[l]
        shift = h @ w3t[l] + b3t[l]
        t_scale = jnp.tanh(t * tws[l])
        t_shift = jnp.tanh(t * twt[l])
        x = x * mask + (1.0 - mask) * (x * jnp.exp(scale * t_scale) + shift * t_shift)
    return x


# ---------------------------------------------------------------------------
# Deterministic synthetic parameter init (shapes implied by module __init__):
#   MLP(dim+1, [H, H], 2*dim) and TimeTanh(2*dim) per layer.
# ---------------------------------------------------------------------------
def init_params(key, dim, n_layers, hidden_dim):
    ks = jax.random.split(key, 11)
    s = 0.2
    w1  = s * jax.random.normal(ks[0], (n_layers, dim + 1, hidden_dim), jnp.float32)
    b1  = s * jax.random.normal(ks[1], (n_layers, 1, hidden_dim), jnp.float32)
    w2  = s * jax.random.normal(ks[2], (n_layers, hidden_dim, hidden_dim), jnp.float32)
    b2  = s * jax.random.normal(ks[3], (n_layers, 1, hidden_dim), jnp.float32)
    w3s = s * jax.random.normal(ks[4], (n_layers, hidden_dim, dim), jnp.float32)
    b3s = s * jax.random.normal(ks[5], (n_layers, 1, dim), jnp.float32)
    w3t = s * jax.random.normal(ks[6], (n_layers, hidden_dim, dim), jnp.float32)
    b3t = s * jax.random.normal(ks[7], (n_layers, 1, dim), jnp.float32)
    tws = jax.random.normal(ks[8], (n_layers, 1, dim), jnp.float32)
    twt = jax.random.normal(ks[9], (n_layers, 1, dim), jnp.float32)
    return (w1, b1, w2, b2, w3s, b3s, w3t, b3t, tws, twt)


if __name__ == "__main__":
    key = jax.random.PRNGKey(0)
    kx, kt, kp = jax.random.split(key, 3)

    B, S, D = 2, 8, 4          # batch, sequence length, data dim
    H, L = 32, 2               # hidden width, number of flow layers

    x = jax.random.normal(kx, (B, S, D), jnp.float32)
    t = jax.random.uniform(kt, (B, S, 1), jnp.float32)
    params = init_params(kp, D, L, H)
    y_ref = coupling_flow_reference(x, t, params)

    # f32 MXU operands: tight check of structure / packing / mask parity.
    packed_f32 = pack_params(params, D, use_bf16_matmul=False)   # packed once, reused
    y32 = jax.block_until_ready(coupling_flow_forward(x, t, packed_f32))
    assert y32.shape == (B, S, D)
    assert jnp.allclose(y32, y_ref, atol=1e-5, rtol=1e-5), "f32 kernel mismatch vs reference"

    # bf16 MXU operands (default perf path on v6e/v7x): relaxed tolerance.
    packed_bf16 = pack_params(params, D, use_bf16_matmul=True)
    ybf = jax.block_until_ready(coupling_flow_forward(x, t, packed_bf16))
    assert jnp.allclose(ybf, y_ref, atol=5e-2, rtol=5e-2), "bf16 kernel mismatch vs reference"

    # x.shape[-2] == 1 repeat_interleave path.
    x1 = x[:, :1, :]
    y1 = jax.block_until_ready(coupling_flow_forward(x1, t, packed_f32))
    y1_ref = coupling_flow_reference(x1, t, params)
    assert jnp.allclose(y1, y1_ref, atol=1e-5, rtol=1e-5), "repeat-path mismatch vs reference"

    # Odd data dim (asymmetric halves) coverage, f32 path.
    D3 = 3
    p3 = init_params(jax.random.PRNGKey(3), D3, L, H)
    x3 = jax.random.normal(jax.random.PRNGKey(13), (B, S, D3), jnp.float32)
    y3 = jax.block_until_ready(
        coupling_flow_forward(x3, t, pack_params(p3, D3, use_bf16_matmul=False)))
    assert jnp.allclose(y3, coupling_flow_reference(x3, t, p3),
                        atol=1e-5, rtol=1e-5), "odd-D mismatch vs reference"

    print("KERNEL_OK")
</pallas_src>

<mosaic_0001>
module attributes {stable_mosaic.version = 11 : i64} {
  func.func @_coupling_flow_kernel(%arg0: i32, %arg1: memref<4x128xf32, #tpu.memory_space<vmem>>, %arg2: memref<1x128xf32, #tpu.memory_space<vmem>>, %arg3: memref<2x32x2xf32, #tpu.memory_space<vmem>>, %arg4: memref<2x32x1xf32, #tpu.memory_space<vmem>>, %arg5: memref<2x32x1xf32, #tpu.memory_space<vmem>>, %arg6: memref<2x32x32xf32, #tpu.memory_space<vmem>>, %arg7: memref<2x32x1xf32, #tpu.memory_space<vmem>>, %arg8: memref<2x2x32xf32, #tpu.memory_space<vmem>>, %arg9: memref<2x2x1xf32, #tpu.memory_space<vmem>>, %arg10: memref<2x2x32xf32, #tpu.memory_space<vmem>>, %arg11: memref<2x2x1xf32, #tpu.memory_space<vmem>>, %arg12: memref<2x2x1xf32, #tpu.memory_space<vmem>>, %arg13: memref<2x2x1xf32, #tpu.memory_space<vmem>>, %arg14: memref<4x128xf32, #tpu.memory_space<vmem>>) attributes {dimension_semantics = [#tpu.dimension_semantics<parallel>], iteration_bounds = array<i64: 1>, scalar_prefetch = 0 : i64, scratch_operands = 0 : i64, tpu.core_type = #tpu.core_type<tc>, window_params = [{transform_indices = @transform_0, window_bounds = array<i64: 4, 128>}, {transform_indices = @transform_1, window_bounds = array<i64: 1, 128>}, {pipeline_mode = #tpu.pipeline_mode<synchronous>, transform_indices = @transform_2, window_bounds = array<i64: 2, 32, 2>}, {pipeline_mode = #tpu.pipeline_mode<synchronous>, transform_indices = @transform_3, window_bounds = array<i64: 2, 32, 1>}, {pipeline_mode = #tpu.pipeline_mode<synchronous>, transform_indices = @transform_4, window_bounds = array<i64: 2, 32, 1>}, {pipeline_mode = #tpu.pipeline_mode<synchronous>, transform_indices = @transform_5, window_bounds = array<i64: 2, 32, 32>}, {pipeline_mode = #tpu.pipeline_mode<synchronous>, transform_indices = @transform_6, window_bounds = array<i64: 2, 32, 1>}, {pipeline_mode = #tpu.pipeline_mode<synchronous>, transform_indices = @transform_7, window_bounds = array<i64: 2, 2, 32>}, {pipeline_mode = #tpu.pipeline_mode<synchronous>, transform_indices = @transform_8, window_bounds = array<i64: 2, 2, 1>}, {pipeline_mode = #tpu.pipeline_mode<synchronous>, transform_indices = @transform_9, window_bounds = array<i64: 2, 2, 32>}, {pipeline_mode = #tpu.pipeline_mode<synchronous>, transform_indices = @transform_10, window_bounds = array<i64: 2, 2, 1>}, {pipeline_mode = #tpu.pipeline_mode<synchronous>, transform_indices = @transform_11, window_bounds = array<i64: 2, 2, 1>}, {pipeline_mode = #tpu.pipeline_mode<synchronous>, transform_indices = @transform_12, window_bounds = array<i64: 2, 2, 1>}, {transform_indices = @transform_13, window_bounds = array<i64: 4, 128>}]} {
    %c0 = arith.constant 0 : index
    %c0_0 = arith.constant 0 : index
    %0 = vector.load %arg2[%c0, %c0_0] : memref<1x128xf32, #tpu.memory_space<vmem>>, vector<1x128xf32>
    %c0_1 = arith.constant 0 : index
    %c0_2 = arith.constant 0 : index
    %1 = vector.load %arg1[%c0_1, %c0_2] : memref<4x128xf32, #tpu.memory_space<vmem>>, vector<4x128xf32>
    %2 = vector.extract_strided_slice %1 {offsets = [0, 0], sizes = [2, 128], strides = [1, 1]} : vector<4x128xf32> to vector<2x128xf32>
    %3 = vector.extract_strided_slice %1 {offsets = [2, 0], sizes = [2, 128], strides = [1, 1]} : vector<4x128xf32> to vector<2x128xf32>
    %c0_3 = arith.constant 0 : index
    %c0_4 = arith.constant 0 : index
    %c0_5 = arith.constant 0 : index
    %4 = vector.load %arg3[%c0_3, %c0_4, %c0_5] : memref<2x32x2xf32, #tpu.memory_space<vmem>>, vector<1x32x2xf32>
    %5 = vector.shape_cast %4 : vector<1x32x2xf32> to vector<32x2xf32>
    %cst = arith.constant dense<0.000000e+00> : vector<32x128xf32>
    %6 = tpu.matmul %5, %2, %cst {dimension_numbers = #tpu.dot_dimension_numbers<[1], [0], [0], [1], [0, 0, 1, 1], [], []>} : vector<32x2xf32>, vector<2x128xf32>, vector<32x128xf32> -> vector<32x128xf32>
    %c0_6 = arith.constant 0 : index
    %c0_7 = arith.constant 0 : index
    %c0_8 = arith.constant 0 : index
    %7 = vector.load %arg4[%c0_6, %c0_7, %c0_8] : memref<2x32x1xf32, #tpu.memory_space<vmem>>, vector<1x32x1xf32>
    %8 = vector.shape_cast %7 : vector<1x32x1xf32> to vector<32x1xf32>
    %9 = vector.broadcast %8 : vector<32x1xf32> to vector<32x128xf32>
    %10 = vector.broadcast %0 : vector<1x128xf32> to vector<32x128xf32>
    %11 = arith.mulf %9, %10 : vector<32x128xf32>
    %12 = arith.addf %6, %11 : vector<32x128xf32>
    %c0_9 = arith.constant 0 : index
    %c0_10 = arith.constant 0 : index
    %c0_11 = arith.constant 0 : index
    %13 = vector.load %arg5[%c0_9, %c0_10, %c0_11] : memref<2x32x1xf32, #tpu.memory_space<vmem>>, vector<1x32x1xf32>
    %14 = vector.shape_cast %13 : vector<1x32x1xf32> to vector<32x1xf32>
    %15 = vector.broadcast %14 : vector<32x1xf32> to vector<32x128xf32>
    %16 = arith.addf %12, %15 : vector<32x128xf32>
    %17 = math.tanh %16 : vector<32x128xf32>
    %c0_12 = arith.constant 0 : index
    %c0_13 = arith.constant 0 : index
    %c0_14 = arith.constant 0 : index
    %18 = vector.load %arg6[%c0_12, %c0_13, %c0_14] : memref<2x32x32xf32, #tpu.memory_space<vmem>>, vector<1x32x32xf32>
    %19 = vector.shape_cast %18 : vector<1x32x32xf32> to vector<32x32xf32>
    %cst_15 = arith.constant dense<0.000000e+00> : vector<32x128xf32>
    %20 = tpu.matmul %19, %17, %cst_15 {dimension_numbers = #tpu.dot_dimension_numbers<[1], [0], [0], [1], [0, 0, 1, 1], [], []>} : vector<32x32xf32>, vector<32x128xf32>, vector<32x128xf32> -> vector<32x128xf32>
    %c0_16 = arith.constant 0 : index
    %c0_17 = arith.constant 0 : index
    %c0_18 = arith.constant 0 : index
    %21 = vector.load %arg7[%c0_16, %c0_17, %c0_18] : memref<2x32x1xf32, #tpu.memory_space<vmem>>, vector<1x32x1xf32>
    %22 = vector.shape_cast %21 : vector<1x32x1xf32> to vector<32x1xf32>
    %23 = vector.broadcast %22 : vector<32x1xf32> to vector<32x128xf32>
    %24 = arith.addf %20, %23 : vector<32x128xf32>
    %25 = math.tanh %24 : vector<32x128xf32>
    %c0_19 = arith.constant 0 : index
    %c0_20 = arith.constant 0 : index
    %c0_21 = arith.constant 0 : index
    %26 = vector.load %arg8[%c0_19, %c0_20, %c0_21] : memref<2x2x32xf32, #tpu.memory_space<vmem>>, vector<1x2x32xf32>
    %27 = vector.shape_cast %26 : vector<1x2x32xf32> to vector<2x32xf32>
    %cst_22 = arith.constant dense<0.000000e+00> : vector<2x128xf32>
    %28 = tpu.matmul %27, %25, %cst_22 {dimension_numbers = #tpu.dot_dimension_numbers<[1], [0], [0], [1], [0, 0, 1, 1], [], []>} : vector<2x32xf32>, vector<32x128xf32>, vector<2x128xf32> -> vector<2x128xf32>
    %c0_23 = arith.constant 0 : index
    %c0_24 = arith.constant 0 : index
    %c0_25 = arith.constant 0 : index
    %29 = vector.load %arg9[%c0_23, %c0_24, %c0_25] : memref<2x2x1xf32, #tpu.memory_space<vmem>>, vector<1x2x1xf32>
    %30 = vector.shape_cast %29 : vector<1x2x1xf32> to vector<2x1xf32>
    %31 = vector.broadcast %30 : vector<2x1xf32> to vector<2x128xf32>
    %32 = arith.addf %28, %31 : vector<2x128xf32>
    %c0_26 = arith.constant 0 : index
    %c0_27 = arith.constant 0 : index
    %c0_28 = arith.constant 0 : index
    %33 = vector.load %arg10[%c0_26, %c0_27, %c0_28] : memref<2x2x32xf32, #tpu.memory_space<vmem>>, vector<1x2x32xf32>
    %34 = vector.shape_cast %33 : vector<1x2x32xf32> to vector<2x32xf32>
    %cst_29 = arith.constant dense<0.000000e+00> : vector<2x128xf32>
    %35 = tpu.matmul %34, %25, %cst_29 {dimension_numbers = #tpu.dot_dimension_numbers<[1], [0], [0], [1], [0, 0, 1, 1], [], []>} : vector<2x32xf32>, vector<32x128xf32>, vector<2x128xf32> -> vector<2x128xf32>
    %c0_30 = arith.constant 0 : index
    %c0_31 = arith.constant 0 : index
    %c0_32 = arith.constant 0 : index
    %36 = vector.load %arg11[%c0_30, %c0_31, %c0_32] : memref<2x2x1xf32, #tpu.memory_space<vmem>>, vector<1x2x1xf32>
    %37 = vector.shape_cast %36 : vector<1x2x1xf32> to vector<2x1xf32>
    %38 = vector.broadcast %37 : vector<2x1xf32> to vector<2x128xf32>
    %39 = arith.addf %35, %38 : vector<2x128xf32>
    %c0_33 = arith.constant 0 : index
    %c0_34 = arith.constant 0 : index
    %c0_35 = arith.constant 0 : index
    %40 = vector.load %arg12[%c0_33, %c0_34, %c0_35] : memref<2x2x1xf32, #tpu.memory_space<vmem>>, vector<1x2x1xf32>
    %41 = vector.shape_cast %40 : vector<1x2x1xf32> to vector<2x1xf32>
    %42 = vector.broadcast %41 : vector<2x1xf32> to vector<2x128xf32>
    %43 = vector.broadcast %0 : vector<1x128xf32> to vector<2x128xf32>
    %44 = arith.mulf %42, %43 : vector<2x128xf32>
    %45 = math.tanh %44 : vector<2x128xf32>
    %c0_36 = arith.constant 0 : index
    %c0_37 = arith.constant 0 : index
    %c0_38 = arith.constant 0 : index
    %46 = vector.load %arg13[%c0_36, %c0_37, %c0_38] : memref<2x2x1xf32, #tpu.memory_space<vmem>>, vector<1x2x1xf32>
    %47 = vector.shape_cast %46 : vector<1x2x1xf32> to vector<2x1xf32>
    %48 = vector.broadcast %47 : vector<2x1xf32> to vector<2x128xf32>
    %49 = vector.broadcast %0 : vector<1x128xf32> to vector<2x128xf32>
    %50 = arith.mulf %48, %49 : vector<2x128xf32>
    %51 = math.tanh %50 : vector<2x128xf32>
    %52 = arith.mulf %32, %45 : vector<2x128xf32>
    %53 = math.exp %52 : vector<2x128xf32>
    %54 = arith.mulf %39, %51 : vector<2x128xf32>
    %55 = arith.mulf %3, %53 : vector<2x128xf32>
    %56 = arith.addf %55, %54 : vector<2x128xf32>
    %c1 = arith.constant 1 : index
    %c0_39 = arith.constant 0 : index
    %c0_40 = arith.constant 0 : index
    %57 = vector.load %arg3[%c1, %c0_39, %c0_40] : memref<2x32x2xf32, #tpu.memory_space<vmem>>, vector<1x32x2xf32>
    %58 = vector.shape_cast %57 : vector<1x32x2xf32> to vector<32x2xf32>
    %cst_41 = arith.constant dense<0.000000e+00> : vector<32x128xf32>
    %59 = tpu.matmul %58, %56, %cst_41 {dimension_numbers = #tpu.dot_dimension_numbers<[1], [0], [0], [1], [0, 0, 1, 1], [], []>} : vector<32x2xf32>, vector<2x128xf32>, vector<32x128xf32> -> vector<32x128xf32>
    %c1_42 = arith.constant 1 : index
    %c0_43 = arith.constant 0 : index
    %c0_44 = arith.constant 0 : index
    %60 = vector.load %arg4[%c1_42, %c0_43, %c0_44] : memref<2x32x1xf32, #tpu.memory_space<vmem>>, vector<1x32x1xf32>
    %61 = vector.shape_cast %60 : vector<1x32x1xf32> to vector<32x1xf32>
    %62 = vector.broadcast %61 : vector<32x1xf32> to vector<32x128xf32>
    %63 = vector.broadcast %0 : vector<1x128xf32> to vector<32x128xf32>
    %64 = arith.mulf %62, %63 : vector<32x128xf32>
    %65 = arith.addf %59, %64 : vector<32x128xf32>
    %c1_45 = arith.constant 1 : index
    %c0_46 = arith.constant 0 : index
    %c0_47 = arith.constant 0 : index
    %66 = vector.load %arg5[%c1_45, %c0_46, %c0_47] : memref<2x32x1xf32, #tpu.memory_space<vmem>>, vector<1x32x1xf32>
    %67 = vector.shape_cast %66 : vector<1x32x1xf32> to vector<32x1xf32>
    %68 = vector.broadcast %67 : vector<32x1xf32> to vector<32x128xf32>
    %69 = arith.addf %65, %68 : vector<32x128xf32>
    %70 = math.tanh %69 : vector<32x128xf32>
    %c1_48 = arith.constant 1 : index
    %c0_49 = arith.constant 0 : index
    %c0_50 = arith.constant 0 : index
    %71 = vector.load %arg6[%c1_48, %c0_49, %c0_50] : memref<2x32x32xf32, #tpu.memory_space<vmem>>, vector<1x32x32xf32>
    %72 = vector.shape_cast %71 : vector<1x32x32xf32> to vector<32x32xf32>
    %cst_51 = arith.constant dense<0.000000e+00> : vector<32x128xf32>
    %73 = tpu.matmul %72, %70, %cst_51 {dimension_numbers = #tpu.dot_dimension_numbers<[1], [0], [0], [1], [0, 0, 1, 1], [], []>} : vector<32x32xf32>, vector<32x128xf32>, vector<32x128xf32> -> vector<32x128xf32>
    %c1_52 = arith.constant 1 : index
    %c0_53 = arith.constant 0 : index
    %c0_54 = arith.constant 0 : index
    %74 = vector.load %arg7[%c1_52, %c0_53, %c0_54] : memref<2x32x1xf32, #tpu.memory_space<vmem>>, vector<1x32x1xf32>
    %75 = vector.shape_cast %74 : vector<1x32x1xf32> to vector<32x1xf32>
    %76 = vector.broadcast %75 : vector<32x1xf32> to vector<32x128xf32>
    %77 = arith.addf %73, %76 : vector<32x128xf32>
    %78 = math.tanh %77 : vector<32x128xf32>
    %c1_55 = arith.constant 1 : index
    %c0_56 = arith.constant 0 : index
    %c0_57 = arith.constant 0 : index
    %79 = vector.load %arg8[%c1_55, %c0_56, %c0_57] : memref<2x2x32xf32, #tpu.memory_space<vmem>>, vector<1x2x32xf32>
    %80 = vector.shape_cast %79 : vector<1x2x32xf32> to vector<2x32xf32>
    %cst_58 = arith.constant dense<0.000000e+00> : vector<2x128xf32>
    %81 = tpu.matmul %80, %78, %cst_58 {dimension_numbers = #tpu.dot_dimension_numbers<[1], [0], [0], [1], [0, 0, 1, 1], [], []>} : vector<2x32xf32>, vector<32x128xf32>, vector<2x128xf32> -> vector<2x128xf32>
    %c1_59 = arith.constant 1 : index
    %c0_60 = arith.constant 0 : index
    %c0_61 = arith.constant 0 : index
    %82 = vector.load %arg9[%c1_59, %c0_60, %c0_61] : memref<2x2x1xf32, #tpu.memory_space<vmem>>, vector<1x2x1xf32>
    %83 = vector.shape_cast %82 : vector<1x2x1xf32> to vector<2x1xf32>
    %84 = vector.broadcast %83 : vector<2x1xf32> to vector<2x128xf32>
    %85 = arith.addf %81, %84 : vector<2x128xf32>
    %c1_62 = arith.constant 1 : index
    %c0_63 = arith.constant 0 : index
    %c0_64 = arith.constant 0 : index
    %86 = vector.load %arg10[%c1_62, %c0_63, %c0_64] : memref<2x2x32xf32, #tpu.memory_space<vmem>>, vector<1x2x32xf32>
    %87 = vector.shape_cast %86 : vector<1x2x32xf32> to vector<2x32xf32>
    %cst_65 = arith.constant dense<0.000000e+00> : vector<2x128xf32>
    %88 = tpu.matmul %87, %78, %cst_65 {dimension_numbers = #tpu.dot_dimension_numbers<[1], [0], [0], [1], [0, 0, 1, 1], [], []>} : vector<2x32xf32>, vector<32x128xf32>, vector<2x128xf32> -> vector<2x128xf32>
    %c1_66 = arith.constant 1 : index
    %c0_67 = arith.constant 0 : index
    %c0_68 = arith.constant 0 : index
    %89 = vector.load %arg11[%c1_66, %c0_67, %c0_68] : memref<2x2x1xf32, #tpu.memory_space<vmem>>, vector<1x2x1xf32>
    %90 = vector.shape_cast %89 : vector<1x2x1xf32> to vector<2x1xf32>
    %91 = vector.broadcast %90 : vector<2x1xf32> to vector<2x128xf32>
    %92 = arith.addf %88, %91 : vector<2x128xf32>
    %c1_69 = arith.constant 1 : index
    %c0_70 = arith.constant 0 : index
    %c0_71 = arith.constant 0 : index
    %93 = vector.load %arg12[%c1_69, %c0_70, %c0_71] : memref<2x2x1xf32, #tpu.memory_space<vmem>>, vector<1x2x1xf32>
    %94 = vector.shape_cast %93 : vector<1x2x1xf32> to vector<2x1xf32>
    %95 = vector.broadcast %94 : vector<2x1xf32> to vector<2x128xf32>
    %96 = vector.broadcast %0 : vector<1x128xf32> to vector<2x128xf32>
    %97 = arith.mulf %95, %96 : vector<2x128xf32>
    %98 = math.tanh %97 : vector<2x128xf32>
    %c1_72 = arith.constant 1 : index
    %c0_73 = arith.constant 0 : index
    %c0_74 = arith.constant 0 : index
    %99 = vector.load %arg13[%c1_72, %c0_73, %c0_74] : memref<2x2x1xf32, #tpu.memory_space<vmem>>, vector<1x2x1xf32>
    %100 = vector.shape_cast %99 : vector<1x2x1xf32> to vector<2x1xf32>
    %101 = vector.broadcast %100 : vector<2x1xf32> to vector<2x128xf32>
    %102 = vector.broadcast %0 : vector<1x128xf32> to vector<2x128xf32>
    %103 = arith.mulf %101, %102 : vector<2x128xf32>
    %104 = math.tanh %103 : vector<2x128xf32>
    %105 = arith.mulf %85, %98 : vector<2x128xf32>
    %106 = math.exp %105 : vector<2x128xf32>
    %107 = arith.mulf %92, %104 : vector<2x128xf32>
    %108 = arith.mulf %2, %106 : vector<2x128xf32>
    %109 = arith.addf %108, %107 : vector<2x128xf32>
    %110 = tpu.concatenate %109, %56 in 0 : vector<2x128xf32>, vector<2x128xf32> -> vector<4x128xf32>
    %c0_75 = arith.constant 0 : index
    %c0_76 = arith.constant 0 : index
    %111 = vector.load %arg14[%c0_75, %c0_76] : memref<4x128xf32, #tpu.memory_space<vmem>>, vector<4x128xf32>
    tpu.vector_store %arg14[%c0_75, %c0_76], %110 {strides = array<i32>} : memref<4x128xf32, #tpu.memory_space<vmem>>, vector<4x128xf32>,
    return
  }
  func.func @transform_0(%arg0: i32) -> (i32, i32) {
    %c0_i32 = arith.constant 0 : i32
    %c0_i32_0 = arith.constant 0 : i32
    return %c0_i32, %arg0 : i32, i32
  }
  func.func @transform_1(%arg0: i32) -> (i32, i32) {
    %c0_i32 = arith.constant 0 : i32
    %c0_i32_0 = arith.constant 0 : i32
    return %c0_i32, %arg0 : i32, i32
  }
  func.func @transform_2(%arg0: i32) -> (i32, i32, i32) {
    %c0_i32 = arith.constant 0 : i32
    %c0_i32_0 = arith.constant 0 : i32
    %c0_i32_1 = arith.constant 0 : i32
    %c0_i32_2 = arith.constant 0 : i32
    return %c0_i32, %c0_i32_0, %c0_i32_1 : i32, i32, i32
  }
  func.func @transform_3(%arg0: i32) -> (i32, i32, i32) {
    %c0_i32 = arith.constant 0 : i32
    %c0_i32_0 = arith.constant 0 : i32
    %c0_i32_1 = arith.constant 0 : i32
    %c0_i32_2 = arith.constant 0 : i32
    return %c0_i32, %c0_i32_0, %c0_i32_1 : i32, i32, i32
  }
  func.func @transform_4(%arg0: i32) -> (i32, i32, i32) {
    %c0_i32 = arith.constant 0 : i32
    %c0_i32_0 = arith.constant 0 : i32
    %c0_i32_1 = arith.constant 0 : i32
    %c0_i32_2 = arith.constant 0 : i32
    return %c0_i32, %c0_i32_0, %c0_i32_1 : i32, i32, i32
  }
  func.func @transform_5(%arg0: i32) -> (i32, i32, i32) {
    %c0_i32 = arith.constant 0 : i32
    %c0_i32_0 = arith.constant 0 : i32
    %c0_i32_1 = arith.constant 0 : i32
    %c0_i32_2 = arith.constant 0 : i32
    return %c0_i32, %c0_i32_0, %c0_i32_1 : i32, i32, i32
  }
  func.func @transform_6(%arg0: i32) -> (i32, i32, i32) {
    %c0_i32 = arith.constant 0 : i32
    %c0_i32_0 = arith.constant 0 : i32
    %c0_i32_1 = arith.constant 0 : i32
    %c0_i32_2 = arith.constant 0 : i32
    return %c0_i32, %c0_i32_0, %c0_i32_1 : i32, i32, i32
  }
  func.func @transform_7(%arg0: i32) -> (i32, i32, i32) {
    %c0_i32 = arith.constant 0 : i32
    %c0_i32_0 = arith.constant 0 : i32
    %c0_i32_1 = arith.constant 0 : i32
    %c0_i32_2 = arith.constant 0 : i32
    return %c0_i32, %c0_i32_0, %c0_i32_1 : i32, i32, i32
  }
  func.func @transform_8(%arg0: i32) -> (i32, i32, i32) {
    %c0_i32 = arith.constant 0 : i32
    %c0_i32_0 = arith.constant 0 : i32
    %c0_i32_1 = arith.constant 0 : i32
    %c0_i32_2 = arith.constant 0 : i32
    return %c0_i32, %c0_i32_0, %c0_i32_1 : i32, i32, i32
  }
  func.func @transform_9(%arg0: i32) -> (i32, i32, i32) {
    %c0_i32 = arith.constant 0 : i32
    %c0_i32_0 = arith.constant 0 : i32
    %c0_i32_1 = arith.constant 0 : i32
    %c0_i32_2 = arith.constant 0 : i32
    return %c0_i32, %c0_i32_0, %c0_i32_1 : i32, i32, i32
  }
  func.func @transform_10(%arg0: i32) -> (i32, i32, i32) {
    %c0_i32 = arith.constant 0 : i32
    %c0_i32_0 = arith.constant 0 : i32
    %c0_i32_1 = arith.constant 0 : i32
    %c0_i32_2 = arith.constant 0 : i32
    return %c0_i32, %c0_i32_0, %c0_i32_1 : i32, i32, i32
  }
  func.func @transform_11(%arg0: i32) -> (i32, i32, i32) {
    %c0_i32 = arith.constant 0 : i32
    %c0_i32_0 = arith.constant 0 : i32
    %c0_i32_1 = arith.constant 0 : i32
    %c0_i32_2 = arith.constant 0 : i32
    return %c0_i32, %c0_i32_0, %c0_i32_1 : i32, i32, i32
  }
  func.func @transform_12(%arg0: i32) -> (i32, i32, i32) {
    %c0_i32 = arith.constant 0 : i32
    %c0_i32_0 = arith.constant 0 : i32
    %c0_i32_1 = arith.constant 0 : i32
    %c0_i32_2 = arith.constant 0 : i32
    return %c0_i32, %c0_i32_0, %c0_i32_1 : i32, i32, i32
  }
  func.func @transform_13(%arg0: i32) -> (i32, i32) {
    %c0_i32 = arith.constant 0 : i32
    %c0_i32_0 = arith.constant 0 : i32
    return %c0_i32, %arg0 : i32, i32
  }
}

module attributes {stable_mosaic.version = 11 : i64} {
  func.func @_coupling_flow_kernel(%arg0: i32, %arg1: memref<4x128xf32, #tpu.memory_space<vmem>>, %arg2: memref<1x128xf32, #tpu.memory_space<vmem>>, %arg3: memref<2x32x2xf32, #tpu.memory_space<vmem>>, %arg4: memref<2x32x1xf32, #tpu.memory_space<vmem>>, %arg5: memref<2x32x1xf32, #tpu.memory_space<vmem>>, %arg6: memref<2x32x32xf32, #tpu.memory_space<vmem>>, %arg7: memref<2x32x1xf32, #tpu.memory_space<vmem>>, %arg8: memref<2x2x32xf32, #tpu.memory_space<vmem>>, %arg9: memref<2x2x1xf32, #tpu.memory_space<vmem>>, %arg10: memref<2x2x32xf32, #tpu.memory_space<vmem>>, %arg11: memref<2x2x1xf32, #tpu.memory_space<vmem>>, %arg12: memref<2x2x1xf32, #tpu.memory_space<vmem>>, %arg13: memref<2x2x1xf32, #tpu.memory_space<vmem>>, %arg14: memref<4x128xf32, #tpu.memory_space<vmem>>) attributes {dimension_semantics = [#tpu.dimension_semantics<parallel>], iteration_bounds = array<i64: 1>, scalar_prefetch = 0 : i64, scratch_operands = 0 : i64, tpu.core_type = #tpu.core_type<tc>, window_params = [{transform_indices = @transform_0, window_bounds = array<i64: 4, 128>}, {transform_indices = @transform_1, window_bounds = array<i64: 1, 128>}, {pipeline_mode = #tpu.pipeline_mode<synchronous>, transform_indices = @transform_2, window_bounds = array<i64: 2, 32, 2>}, {pipeline_mode = #tpu.pipeline_mode<synchronous>, transform_indices = @transform_3, window_bounds = array<i64: 2, 32, 1>}, {pipeline_mode = #tpu.pipeline_mode<synchronous>, transform_indices = @transform_4, window_bounds = array<i64: 2, 32, 1>}, {pipeline_mode = #tpu.pipeline_mode<synchronous>, transform_indices = @transform_5, window_bounds = array<i64: 2, 32, 32>}, {pipeline_mode = #tpu.pipeline_mode<synchronous>, transform_indices = @transform_6, window_bounds = array<i64: 2, 32, 1>}, {pipeline_mode = #tpu.pipeline_mode<synchronous>, transform_indices = @transform_7, window_bounds = array<i64: 2, 2, 32>}, {pipeline_mode = #tpu.pipeline_mode<synchronous>, transform_indices = @transform_8, window_bounds = array<i64: 2, 2, 1>}, {pipeline_mode = #tpu.pipeline_mode<synchronous>, transform_indices = @transform_9, window_bounds = array<i64: 2, 2, 32>}, {pipeline_mode = #tpu.pipeline_mode<synchronous>, transform_indices = @transform_10, window_bounds = array<i64: 2, 2, 1>}, {pipeline_mode = #tpu.pipeline_mode<synchronous>, transform_indices = @transform_11, window_bounds = array<i64: 2, 2, 1>}, {pipeline_mode = #tpu.pipeline_mode<synchronous>, transform_indices = @transform_12, window_bounds = array<i64: 2, 2, 1>}, {transform_indices = @transform_13, window_bounds = array<i64: 4, 128>}]} {
    %c0 = arith.constant 0 : index
    %c0_0 = arith.constant 0 : index
    %0 = vector.load %arg2[%c0, %c0_0] : memref<1x128xf32, #tpu.memory_space<vmem>>, vector<1x128xf32>
    %c0_1 = arith.constant 0 : index
    %c0_2 = arith.constant 0 : index
    %1 = vector.load %arg1[%c0_1, %c0_2] : memref<4x128xf32, #tpu.memory_space<vmem>>, vector<4x128xf32>
    %2 = vector.extract_strided_slice %1 {offsets = [0, 0], sizes = [2, 128], strides = [1, 1]} : vector<4x128xf32> to vector<2x128xf32>
    %3 = vector.extract_strided_slice %1 {offsets = [2, 0], sizes = [2, 128], strides = [1, 1]} : vector<4x128xf32> to vector<2x128xf32>
    %c0_3 = arith.constant 0 : index
    %c0_4 = arith.constant 0 : index
    %c0_5 = arith.constant 0 : index
    %4 = vector.load %arg3[%c0_3, %c0_4, %c0_5] : memref<2x32x2xf32, #tpu.memory_space<vmem>>, vector<1x32x2xf32>
    %5 = vector.shape_cast %4 : vector<1x32x2xf32> to vector<32x2xf32>
    %cst = arith.constant dense<0.000000e+00> : vector<32x128xf32>
    %6 = tpu.matmul %5, %2, %cst {dimension_numbers = #tpu.dot_dimension_numbers<[1], [0], [0], [1], [0, 0, 1, 1], [], []>} : vector<32x2xf32>, vector<2x128xf32>, vector<32x128xf32> -> vector<32x128xf32>
    %c0_6 = arith.constant 0 : index
    %c0_7 = arith.constant 0 : index
    %c0_8 = arith.constant 0 : index
    %7 = vector.load %arg4[%c0_6, %c0_7, %c0_8] : memref<2x32x1xf32, #tpu.memory_space<vmem>>, vector<1x32x1xf32>
    %8 = vector.shape_cast %7 : vector<1x32x1xf32> to vector<32x1xf32>
    %9 = vector.broadcast %8 : vector<32x1xf32> to vector<32x128xf32>
    %10 = vector.broadcast %0 : vector<1x128xf32> to vector<32x128xf32>
    %11 = arith.mulf %9, %10 : vector<32x128xf32>
    %12 = arith.addf %6, %11 : vector<32x128xf32>
    %c0_9 = arith.constant 0 : index
    %c0_10 = arith.constant 0 : index
    %c0_11 = arith.constant 0 : index
    %13 = vector.load %arg5[%c0_9, %c0_10, %c0_11] : memref<2x32x1xf32, #tpu.memory_space<vmem>>, vector<1x32x1xf32>
    %14 = vector.shape_cast %13 : vector<1x32x1xf32> to vector<32x1xf32>
    %15 = vector.broadcast %14 : vector<32x1xf32> to vector<32x128xf32>
    %16 = arith.addf %12, %15 : vector<32x128xf32>
    %17 = math.tanh %16 : vector<32x128xf32>
    %c0_12 = arith.constant 0 : index
    %c0_13 = arith.constant 0 : index
    %c0_14 = arith.constant 0 : index
    %18 = vector.load %arg6[%c0_12, %c0_13, %c0_14] : memref<2x32x32xf32, #tpu.memory_space<vmem>>, vector<1x32x32xf32>
    %19 = vector.shape_cast %18 : vector<1x32x32xf32> to vector<32x32xf32>
    %cst_15 = arith.constant dense<0.000000e+00> : vector<32x128xf32>
    %20 = tpu.matmul %19, %17, %cst_15 {dimension_numbers = #tpu.dot_dimension_numbers<[1], [0], [0], [1], [0, 0, 1, 1], [], []>} : vector<32x32xf32>, vector<32x128xf32>, vector<32x128xf32> -> vector<32x128xf32>
    %c0_16 = arith.constant 0 : index
    %c0_17 = arith.constant 0 : index
    %c0_18 = arith.constant 0 : index
    %21 = vector.load %arg7[%c0_16, %c0_17, %c0_18] : memref<2x32x1xf32, #tpu.memory_space<vmem>>, vector<1x32x1xf32>
    %22 = vector.shape_cast %21 : vector<1x32x1xf32> to vector<32x1xf32>
    %23 = vector.broadcast %22 : vector<32x1xf32> to vector<32x128xf32>
    %24 = arith.addf %20, %23 : vector<32x128xf32>
    %25 = math.tanh %24 : vector<32x128xf32>
    %c0_19 = arith.constant 0 : index
    %c0_20 = arith.constant 0 : index
    %c0_21 = arith.constant 0 : index
    %26 = vector.load %arg8[%c0_19, %c0_20, %c0_21] : memref<2x2x32xf32, #tpu.memory_space<vmem>>, vector<1x2x32xf32>
    %27 = vector.shape_cast %26 : vector<1x2x32xf32> to vector<2x32xf32>
    %cst_22 = arith.constant dense<0.000000e+00> : vector<2x128xf32>
    %28 = tpu.matmul %27, %25, %cst_22 {dimension_numbers = #tpu.dot_dimension_numbers<[1], [0], [0], [1], [0, 0, 1, 1], [], []>} : vector<2x32xf32>, vector<32x128xf32>, vector<2x128xf32> -> vector<2x128xf32>
    %c0_23 = arith.constant 0 : index
    %c0_24 = arith.constant 0 : index
    %c0_25 = arith.constant 0 : index
    %29 = vector.load %arg9[%c0_23, %c0_24, %c0_25] : memref<2x2x1xf32, #tpu.memory_space<vmem>>, vector<1x2x1xf32>
    %30 = vector.shape_cast %29 : vector<1x2x1xf32> to vector<2x1xf32>
    %31 = vector.broadcast %30 : vector<2x1xf32> to vector<2x128xf32>
    %32 = arith.addf %28, %31 : vector<2x128xf32>
    %c0_26 = arith.constant 0 : index
    %c0_27 = arith.constant 0 : index
    %c0_28 = arith.constant 0 : index
    %33 = vector.load %arg10[%c0_26, %c0_27, %c0_28] : memref<2x2x32xf32, #tpu.memory_space<vmem>>, vector<1x2x32xf32>
    %34 = vector.shape_cast %33 : vector<1x2x32xf32> to vector<2x32xf32>
    %cst_29 = arith.constant dense<0.000000e+00> : vector<2x128xf32>
    %35 = tpu.matmul %34, %25, %cst_29 {dimension_numbers = #tpu.dot_dimension_numbers<[1], [0], [0], [1], [0, 0, 1, 1], [], []>} : vector<2x32xf32>, vector<32x128xf32>, vector<2x128xf32> -> vector<2x128xf32>
    %c0_30 = arith.constant 0 : index
    %c0_31 = arith.constant 0 : index
    %c0_32 = arith.constant 0 : index
    %36 = vector.load %arg11[%c0_30, %c0_31, %c0_32] : memref<2x2x1xf32, #tpu.memory_space<vmem>>, vector<1x2x1xf32>
    %37 = vector.shape_cast %36 : vector<1x2x1xf32> to vector<2x1xf32>
    %38 = vector.broadcast %37 : vector<2x1xf32> to vector<2x128xf32>
    %39 = arith.addf %35, %38 : vector<2x128xf32>
    %c0_33 = arith.constant 0 : index
    %c0_34 = arith.constant 0 : index
    %c0_35 = arith.constant 0 : index
    %40 = vector.load %arg12[%c0_33, %c0_34, %c0_35] : memref<2x2x1xf32, #tpu.memory_space<vmem>>, vector<1x2x1xf32>
    %41 = vector.shape_cast %40 : vector<1x2x1xf32> to vector<2x1xf32>
    %42 = vector.broadcast %41 : vector<2x1xf32> to vector<2x128xf32>
    %43 = vector.broadcast %0 : vector<1x128xf32> to vector<2x128xf32>
    %44 = arith.mulf %42, %43 : vector<2x128xf32>
    %45 = math.tanh %44 : vector<2x128xf32>
    %c0_36 = arith.constant 0 : index
    %c0_37 = arith.constant 0 : index
    %c0_38 = arith.constant 0 : index
    %46 = vector.load %arg13[%c0_36, %c0_37, %c0_38] : memref<2x2x1xf32, #tpu.memory_space<vmem>>, vector<1x2x1xf32>
    %47 = vector.shape_cast %46 : vector<1x2x1xf32> to vector<2x1xf32>
    %48 = vector.broadcast %47 : vector<2x1xf32> to vector<2x128xf32>
    %49 = vector.broadcast %0 : vector<1x128xf32> to vector<2x128xf32>
    %50 = arith.mulf %48, %49 : vector<2x128xf32>
    %51 = math.tanh %50 : vector<2x128xf32>
    %52 = arith.mulf %32, %45 : vector<2x128xf32>
    %53 = math.exp %52 : vector<2x128xf32>
    %54 = arith.mulf %39, %51 : vector<2x128xf32>
    %55 = arith.mulf %3, %53 : vector<2x128xf32>
    %56 = arith.addf %55, %54 : vector<2x128xf32>
    %c1 = arith.constant 1 : index
    %c0_39 = arith.constant 0 : index
    %c0_40 = arith.constant 0 : index
    %57 = vector.load %arg3[%c1, %c0_39, %c0_40] : memref<2x32x2xf32, #tpu.memory_space<vmem>>, vector<1x32x2xf32>
    %58 = vector.shape_cast %57 : vector<1x32x2xf32> to vector<32x2xf32>
    %cst_41 = arith.constant dense<0.000000e+00> : vector<32x128xf32>
    %59 = tpu.matmul %58, %56, %cst_41 {dimension_numbers = #tpu.dot_dimension_numbers<[1], [0], [0], [1], [0, 0, 1, 1], [], []>} : vector<32x2xf32>, vector<2x128xf32>, vector<32x128xf32> -> vector<32x128xf32>
    %c1_42 = arith.constant 1 : index
    %c0_43 = arith.constant 0 : index
    %c0_44 = arith.constant 0 : index
    %60 = vector.load %arg4[%c1_42, %c0_43, %c0_44] : memref<2x32x1xf32, #tpu.memory_space<vmem>>, vector<1x32x1xf32>
    %61 = vector.shape_cast %60 : vector<1x32x1xf32> to vector<32x1xf32>
    %62 = vector.broadcast %61 : vector<32x1xf32> to vector<32x128xf32>
    %63 = vector.broadcast %0 : vector<1x128xf32> to vector<32x128xf32>
    %64 = arith.mulf %62, %63 : vector<32x128xf32>
    %65 = arith.addf %59, %64 : vector<32x128xf32>
    %c1_45 = arith.constant 1 : index
    %c0_46 = arith.constant 0 : index
    %c0_47 = arith.constant 0 : index
    %66 = vector.load %arg5[%c1_45, %c0_46, %c0_47] : memref<2x32x1xf32, #tpu.memory_space<vmem>>, vector<1x32x1xf32>
    %67 = vector.shape_cast %66 : vector<1x32x1xf32> to vector<32x1xf32>
    %68 = vector.broadcast %67 : vector<32x1xf32> to vector<32x128xf32>
    %69 = arith.addf %65, %68 : vector<32x128xf32>
    %70 = math.tanh %69 : vector<32x128xf32>
    %c1_48 = arith.constant 1 : index
    %c0_49 = arith.constant 0 : index
    %c0_50 = arith.constant 0 : index
    %71 = vector.load %arg6[%c1_48, %c0_49, %c0_50] : memref<2x32x32xf32, #tpu.memory_space<vmem>>, vector<1x32x32xf32>
    %72 = vector.shape_cast %71 : vector<1x32x32xf32> to vector<32x32xf32>
    %cst_51 = arith.constant dense<0.000000e+00> : vector<32x128xf32>
    %73 = tpu.matmul %72, %70, %cst_51 {dimension_numbers = #tpu.dot_dimension_numbers<[1], [0], [0], [1], [0, 0, 1, 1], [], []>} : vector<32x32xf32>, vector<32x128xf32>, vector<32x128xf32> -> vector<32x128xf32>
    %c1_52 = arith.constant 1 : index
    %c0_53 = arith.constant 0 : index
    %c0_54 = arith.constant 0 : index
    %74 = vector.load %arg7[%c1_52, %c0_53, %c0_54] : memref<2x32x1xf32, #tpu.memory_space<vmem>>, vector<1x32x1xf32>
    %75 = vector.shape_cast %74 : vector<1x32x1xf32> to vector<32x1xf32>
    %76 = vector.broadcast %75 : vector<32x1xf32> to vector<32x128xf32>
    %77 = arith.addf %73, %76 : vector<32x128xf32>
    %78 = math.tanh %77 : vector<32x128xf32>
    %c1_55 = arith.constant 1 : index
    %c0_56 = arith.constant 0 : index
    %c0_57 = arith.constant 0 : index
    %79 = vector.load %arg8[%c1_55, %c0_56, %c0_57] : memref<2x2x32xf32, #tpu.memory_space<vmem>>, vector<1x2x32xf32>
    %80 = vector.shape_cast %79 : vector<1x2x32xf32> to vector<2x32xf32>
    %cst_58 = arith.constant dense<0.000000e+00> : vector<2x128xf32>
    %81 = tpu.matmul %80, %78, %cst_58 {dimension_numbers = #tpu.dot_dimension_numbers<[1], [0], [0], [1], [0, 0, 1, 1], [], []>} : vector<2x32xf32>, vector<32x128xf32>, vector<2x128xf32> -> vector<2x128xf32>
    %c1_59 = arith.constant 1 : index
    %c0_60 = arith.constant 0 : index
    %c0_61 = arith.constant 0 : index
    %82 = vector.load %arg9[%c1_59, %c0_60, %c0_61] : memref<2x2x1xf32, #tpu.memory_space<vmem>>, vector<1x2x1xf32>
    %83 = vector.shape_cast %82 : vector<1x2x1xf32> to vector<2x1xf32>
    %84 = vector.broadcast %83 : vector<2x1xf32> to vector<2x128xf32>
    %85 = arith.addf %81, %84 : vector<2x128xf32>
    %c1_62 = arith.constant 1 : index
    %c0_63 = arith.constant 0 : index
    %c0_64 = arith.constant 0 : index
    %86 = vector.load %arg10[%c1_62, %c0_63, %c0_64] : memref<2x2x32xf32, #tpu.memory_space<vmem>>, vector<1x2x32xf32>
    %87 = vector.shape_cast %86 : vector<1x2x32xf32> to vector<2x32xf32>
    %cst_65 = arith.constant dense<0.000000e+00> : vector<2x128xf32>
    %88 = tpu.matmul %87, %78, %cst_65 {dimension_numbers = #tpu.dot_dimension_numbers<[1], [0], [0], [1], [0, 0, 1, 1], [], []>} : vector<2x32xf32>, vector<32x128xf32>, vector<2x128xf32> -> vector<2x128xf32>
    %c1_66 = arith.constant 1 : index
    %c0_67 = arith.constant 0 : index
    %c0_68 = arith.constant 0 : index
    %89 = vector.load %arg11[%c1_66, %c0_67, %c0_68] : memref<2x2x1xf32, #tpu.memory_space<vmem>>, vector<1x2x1xf32>
    %90 = vector.shape_cast %89 : vector<1x2x1xf32> to vector<2x1xf32>
    %91 = vector.broadcast %90 : vector<2x1xf32> to vector<2x128xf32>
    %92 = arith.addf %88, %91 : vector<2x128xf32>
    %c1_69 = arith.constant 1 : index
    %c0_70 = arith.constant 0 : index
    %c0_71 = arith.constant 0 : index
    %93 = vector.load %arg12[%c1_69, %c0_70, %c0_71] : memref<2x2x1xf32, #tpu.memory_space<vmem>>, vector<1x2x1xf32>
    %94 = vector.shape_cast %93 : vector<1x2x1xf32> to vector<2x1xf32>
    %95 = vector.broadcast %94 : vector<2x1xf32> to vector<2x128xf32>
    %96 = vector.broadcast %0 : vector<1x128xf32> to vector<2x128xf32>
    %97 = arith.mulf %95, %96 : vector<2x128xf32>
    %98 = math.tanh %97 : vector<2x128xf32>
    %c1_72 = arith.constant 1 : index
    %c0_73 = arith.constant 0 : index
    %c0_74 = arith.constant 0 : index
    %99 = vector.load %arg13[%c1_72, %c0_73, %c0_74] : memref<2x2x1xf32, #tpu.memory_space<vmem>>, vector<1x2x1xf32>
    %100 = vector.shape_cast %99 : vector<1x2x1xf32> to vector<2x1xf32>
    %101 = vector.broadcast %100 : vector<2x1xf32> to vector<2x128xf32>
    %102 = vector.broadcast %0 : vector<1x128xf32> to vector<2x128xf32>
    %103 = arith.mulf %101, %102 : vector<2x128xf32>
    %104 = math.tanh %103 : vector<2x128xf32>
    %105 = arith.mulf %85, %98 : vector<2x128xf32>
    %106 = math.exp %105 : vector<2x128xf32>
    %107 = arith.mulf %92, %104 : vector<2x128xf32>
    %108 = arith.mulf %2, %106 : vector<2x128xf32>
    %109 = arith.addf %108, %107 : vector<2x128xf32>
    %110 = tpu.concatenate %109, %56 in 0 : vector<2x128xf32>, vector<2x128xf32> -> vector<4x128xf32>
    %c0_75 = arith.constant 0 : index
    %c0_76 = arith.constant 0 : index
    %111 = vector.load %arg14[%c0_75, %c0_76] : memref<4x128xf32, #tpu.memory_space<vmem>>, vector<4x128xf32>
    tpu.vector_store %arg14[%c0_75, %c0_76], %110 {strides = array<i32>} : memref<4x128xf32, #tpu.memory_space<vmem>>, vector<4x128xf32>,
    return
  }
  func.func @transform_0(%arg0: i32) -> (i32, i32) {
    %c0_i32 = arith.constant 0 : i32
    %c0_i32_0 = arith.constant 0 : i32
    return %c0_i32, %arg0 : i32, i32
  }
  func.func @transform_1(%arg0: i32) -> (i32, i32) {
    %c0_i32 = arith.constant 0 : i32
    %c0_i32_0 = arith.constant 0 : i32
    return %c0_i32, %arg0 : i32, i32
  }
  func.func @transform_2(%arg0: i32) -> (i32, i32, i32) {
    %c0_i32 = arith.constant 0 : i32
    %c0_i32_0 = arith.constant 0 : i32
    %c0_i32_1 = arith.constant 0 : i32
    %c0_i32_2 = arith.constant 0 : i32
    return %c0_i32, %c0_i32_0, %c0_i32_1 : i32, i32, i32
  }
  func.func @transform_3(%arg0: i32) -> (i32, i32, i32) {
    %c0_i32 = arith.constant 0 : i32
    %c0_i32_0 = arith.constant 0 : i32
    %c0_i32_1 = arith.constant 0 : i32
    %c0_i32_2 = arith.constant 0 : i32
    return %c0_i32, %c0_i32_0, %c0_i32_1 : i32, i32, i32
  }
  func.func @transform_4(%arg0: i32) -> (i32, i32, i32) {
    %c0_i32 = arith.constant 0 : i32
    %c0_i32_0 = arith.constant 0 : i32
    %c0_i32_1 = arith.constant 0 : i32
    %c0_i32_2 = arith.constant 0 : i32
    return %c0_i32, %c0_i32_0, %c0_i32_1 : i32, i32, i32
  }
  func.func @transform_5(%arg0: i32) -> (i32, i32, i32) {
    %c0_i32 = arith.constant 0 : i32
    %c0_i32_0 = arith.constant 0 : i32
    %c0_i32_1 = arith.constant 0 : i32
    %c0_i32_2 = arith.constant 0 : i32
    return %c0_i32, %c0_i32_0, %c0_i32_1 : i32, i32, i32
  }
  func.func @transform_6(%arg0: i32) -> (i32, i32, i32) {
    %c0_i32 = arith.constant 0 : i32
    %c0_i32_0 = arith.constant 0 : i32
    %c0_i32_1 = arith.constant 0 : i32
    %c0_i32_2 = arith.constant 0 : i32
    return %c0_i32, %c0_i32_0, %c0_i32_1 : i32, i32, i32
  }
  func.func @transform_7(%arg0: i32) -> (i32, i32, i32) {
    %c0_i32 = arith.constant 0 : i32
    %c0_i32_0 = arith.constant 0 : i32
    %c0_i32_1 = arith.constant 0 : i32
    %c0_i32_2 = arith.constant 0 : i32
    return %c0_i32, %c0_i32_0, %c0_i32_1 : i32, i32, i32
  }
  func.func @transform_8(%arg0: i32) -> (i32, i32, i32) {
    %c0_i32 = arith.constant 0 : i32
    %c0_i32_0 = arith.constant 0 : i32
    %c0_i32_1 = arith.constant 0 : i32
    %c0_i32_2 = arith.constant 0 : i32
    return %c0_i32, %c0_i32_0, %c0_i32_1 : i32, i32, i32
  }
  func.func @transform_9(%arg0: i32) -> (i32, i32, i32) {
    %c0_i32 = arith.constant 0 : i32
    %c0_i32_0 = arith.constant 0 : i32
    %c0_i32_1 = arith.constant 0 : i32
    %c0_i32_2 = arith.constant 0 : i32
    return %c0_i32, %c0_i32_0, %c0_i32_1 : i32, i32, i32
  }
  func.func @transform_10(%arg0: i32) -> (i32, i32, i32) {
    %c0_i32 = arith.constant 0 : i32
    %c0_i32_0 = arith.constant 0 : i32
    %c0_i32_1 = arith.constant 0 : i32
    %c0_i32_2 = arith.constant 0 : i32
    return %c0_i32, %c0_i32_0, %c0_i32_1 : i32, i32, i32
  }
  func.func @transform_11(%arg0: i32) -> (i32, i32, i32) {
    %c0_i32 = arith.constant 0 : i32
    %c0_i32_0 = arith.constant 0 : i32
    %c0_i32_1 = arith.constant 0 : i32
    %c0_i32_2 = arith.constant 0 : i32
    return %c0_i32, %c0_i32_0, %c0_i32_1 : i32, i32, i32
  }
  func.func @transform_12(%arg0: i32) -> (i32, i32, i32) {
    %c0_i32 = arith.constant 0 : i32
    %c0_i32_0 = arith.constant 0 : i32
    %c0_i32_1 = arith.constant 0 : i32
    %c0_i32_2 = arith.constant 0 : i32
    return %c0_i32, %c0_i32_0, %c0_i32_1 : i32, i32, i32
  }
  func.func @transform_13(%arg0: i32) -> (i32, i32) {
    %c0_i32 = arith.constant 0 : i32
    %c0_i32_0 = arith.constant 0 : i32
    return %c0_i32, %arg0 : i32, i32
  }
}

</mosaic_0001>

<bundles_post_ra>
// kernel: tpu_custom_call.1
= control target key start
LH: loop header
LB: loop body
LE: loop exit
PB: predicated region body
PF: predicated region fallthrough
CT: control target
= control target key end

     0   :  { %vm95_vm0 = vcmask 1041408   ;;  %v739_v3 = vmov 0   ;;  %vm82_vm1 = vcmask 15360   ;;  %s1022_s0 = inlined_call_operand.vmem [shape: f32[4,128], index: 0, kind: input, shape index: {}]   ;;  %s1023_s1 = inlined_call_operand.vmem [shape: f32[1,128], index: 1, kind: input, shape index: {}]   ;;  %s1024_s2 = inlined_call_operand.vmem [shape: f32[2,32,2], index: 2, kind: input, shape index: {}]   ;;  %s1025_s3 = inlined_call_operand.vmem [shape: f32[2,32,1], index: 3, kind: input, shape index: {}]   ;;  %s1026_s4 = inlined_call_operand.vmem [shape: f32[2,32,1], index: 4, kind: input, shape index: {}]   ;;  %s1027_s5 = inlined_call_operand.vmem [shape: f32[2,32,32], index: 5, kind: input, shape index: {}]   ;;  %s1028_s6 = inlined_call_operand.vmem [shape: f32[2,32,1], index: 6, kind: input, shape index: {}]   ;;  %s1029_s7 = inlined_call_operand.vmem [shape: f32[2,2,32], index: 7, kind: input, shape index: {}]   ;;  %s1030_s8 = inlined_call_operand.vmem [shape: f32[2,2,1], index: 8, kind: input, shape index: {}]   ;;  %s1031_s9 = inlined_call_operand.vmem [shape: f32[2,2,32], index: 9, kind: input, shape index: {}]   ;;  %s1032_s10 = inlined_call_operand.vmem [shape: f32[2,2,1], index: 10, kind: input, shape index: {}]   ;;  %s1033_s11 = inlined_call_operand.vmem [shape: f32[2,2,1], index: 11, kind: input, shape index: {}]   ;;  %s1034_s12 = inlined_call_operand.vmem [shape: f32[2,2,1], index: 12, kind: input, shape index: {}]   ;;  %s1035_s13 = inlined_call_operand.hbm [shape: f32[4,128], index: 13, kind: output, shape index: {}]  }
   0x1   :  { %v814_v0 = vld [vmem:[%s1022_s0] sm:$0xf]  ;;  %v54_v1 = vld [vmem:[%s1025_s3 + $0x18] sm:$0xff]  ;;  %v52_v2 = vld [vmem:[%s1025_s3 + $0x8] sm:$0xff]  ;;  %667 = vset.pattern.permute.xlu2 %v739_v3  ;;  %666 = vset.pattern.permute.xlu1 %v739_v3 }
   0x2   :  { %v51_v4 = vld [vmem:[%s1025_s3] sm:$0xff]  ;;  %665 = vset.pattern.permute.xlu0 %v739_v3  ;;  %615 = vmatpush.msk.msra.mxu0 %vm95_vm0, %v814_v0 }
   0x3   :  { %v47_v5 = vld [vmem:[%s1024_s2] sm:$0xff]  ;;  %72 = vperm.xlu0 %665, %v54_v1   ;;  %62 = vperm.xlu1 %666, %v52_v2  }
   0x4   :  { %57 = vperm.xlu2 %667, %v51_v4   ;;  %616 = vmatmul.msk.f32.vlgmr.msra.gmra.mxu0 %vm82_vm1, %v47_v5 }
   0x5   :  { %18 = vsyncpa [#allocation3], 0  ;;  %v53_v6 = vld [vmem:[%s1025_s3 + $0x10] sm:$0xff]  ;;  %v131_v7 = vld [vmem:[%s1026_s4 + $0x18] sm:$0xff]  ;;  %vm188_vm2 = vcmask 261120   ;;  %s606_s27 = sshll.u32 %s1035_s13, 4  ;;  %s607_s27 = int_to_ptr.hbm [resolvable:$true] %s606_s27 }
   0x6   :  { %v130_v8 = vld [vmem:[%s1026_s4 + $0x10] sm:$0xff]  ;;  %v48_v9 = vld [vmem:[%s1024_s2 + $0x8] sm:$0xff]  ;;  %v128_v11 = vld [vmem:[%s1026_s4] sm:$0xff] }
   0x7   :  { %v129_v10 = vld [vmem:[%s1026_s4 + $0x8] sm:$0xff]  ;;  %v167_v12 = vld [vmem:[%s1028_s6 + $0x18] sm:$0xff]  ;;  %v49_v13 = vld [vmem:[%s1024_s2 + $0x10] sm:$0xff] }
   0x8   :  { %v166_v14 = vld [vmem:[%s1028_s6 + $0x10] sm:$0xff]  ;;  %v165_v15 = vld [vmem:[%s1028_s6 + $0x8] sm:$0xff]  ;;  %v164_v16 = vld [vmem:[%s1028_s6] sm:$0xff] }
   0x9   :  { %v50_v17 = vld [vmem:[%s1024_s2 + $0x18] sm:$0xff]  ;;  %v294_v18 = vld [vmem:[%s1033_s11] sm:$0x3]  ;;  %v632_v23 = vld [vmem:[%s1025_s3 + $0x30] sm:$0xff] }
   0xa   :  { %v235_v19 = vld [vmem:[%s1030_s8] sm:$0x3]  ;;  %v633_v22 = vld [vmem:[%s1025_s3 + $0x38] sm:$0xff]  ;;  %v631_v24 = vld [vmem:[%s1025_s3 + $0x28] sm:$0xff] }
   0xb   :  { %67 = vperm.xlu0 %665, %v53_v6   ;;  %149 = vperm.xlu1 %666, %v131_v7   ;;  %v302_v20 = vld [vmem:[%s1034_s12] sm:$0x3]  ;;  %v642_v25 = vld [vmem:[%s1026_s4 + $0x38] sm:$0xff]  ;;  %v641_v27 = vld [vmem:[%s1026_s4 + $0x30] sm:$0xff] }
   0xc   :  { %144 = vperm.xlu2 %667, %v130_v8   ;;  %617 = vmatmul.msk.f32.gmra.mxu0 %vm82_vm1, %v48_v9  ;;  %v265_v21 = vld [vmem:[%s1032_s10] sm:$0x3]  ;;  %v640_v28 = vld [vmem:[%s1026_s4 + $0x28] sm:$0xff]  ;;  %v650_v30 = vld [vmem:[%s1028_s6 + $0x38] sm:$0xff] }
   0xd   :  { %v630_v26 = vld [vmem:[%s1025_s3 + $0x20] sm:$0xff]  ;;  %v649_v31 = vld [vmem:[%s1028_s6 + $0x30] sm:$0xff]  ;;  %v648_v32 = vld [vmem:[%s1028_s6 + $0x28] sm:$0xff] }
   0xe   :  { %v639_v29 = vld [vmem:[%s1026_s4 + $0x20] sm:$0xff]  ;;  %v161_v5 = vld [vmem:[%s1027_s5 + $0x8] sm:$0xff]  ;;  %v162_v6 = vld [vmem:[%s1027_s5 + $0x10] sm:$0xff] }
   0xf   :  { %v647_v33 = vld [vmem:[%s1028_s6 + $0x20] sm:$0xff]  ;;  %v163_v7 = vld [vmem:[%s1027_s5 + $0x18] sm:$0xff] }
  0x10   :  { %v661_v34 = vld [vmem:[%s1033_s11 + $0x2] sm:$0x3]  ;;  %v933_v44 = vld [vmem:[%s1023_s1] ss:$0 sm:$0xff] }
  0x11   :  { %v656_v35 = vld [vmem:[%s1030_s8 + $0x2] sm:$0x3] }
  0x12   :  { %v662_v36 = vld [vmem:[%s1034_s12 + $0x2] sm:$0x3] }
  0x13   :  { %139 = vperm.xlu0 %665, %v129_v10   ;;  %134 = vperm.xlu1 %666, %v128_v11   ;;  %v659_v37 = vld [vmem:[%s1032_s10 + $0x2] sm:$0x3] }
  0x14   :  { %185 = vperm.xlu2 %667, %v167_v12   ;;  %618 = vmatmul.msk.f32.gmra.mxu0 %vm82_vm1, %v49_v13  ;;  %v160_v3 = vld [vmem:[%s1027_s5] sm:$0xff] }
  0x1b   :  { %180 = vperm.xlu0 %665, %v166_v14   ;;  %175 = vperm.xlu1 %666, %v165_v15  }
  0x1c   :  { %170 = vperm.xlu2 %667, %v164_v16   ;;  %619 = vmatmul.msk.f32.gmra.mxu0 %vm82_vm1, %v50_v17 }
  0x23   :  { %297 = vperm.xlu0 %665, %v294_v18   ;;  %238 = vperm.xlu1 %666, %v235_v19  }
  0x24   :  { %305 = vperm.xlu2 %667, %v302_v20  }
  0x2b   :  { %268 = vperm.xlu0 %665, %v265_v21   ;;  %349 = vperm.xlu1 %666, %v633_v22  }
  0x2c   :  { %344 = vperm.xlu2 %667, %v632_v23   ;;  %v234_v23 = vld [vmem:[%s1029_s7] sm:$0x3] }
  0x33   :  { %339 = vperm.xlu0 %665, %v631_v24   ;;  %423 = vperm.xlu1 %666, %v642_v25   ;;  %v264_v24 = vld [vmem:[%s1031_s9] sm:$0x3] }
  0x34   :  { %334 = vperm.xlu2 %667, %v630_v26  }
  0x3b   :  { %418 = vperm.xlu0 %665, %v641_v27   ;;  %413 = vperm.xlu1 %666, %v640_v28  }
  0x3c   :  { %408 = vperm.xlu2 %667, %v639_v29  }
  0x43   :  { %461 = vperm.xlu0 %665, %v650_v30   ;;  %456 = vperm.xlu1 %666, %v649_v31  }
  0x44   :  { %451 = vperm.xlu2 %667, %v648_v32  }
  0x4b   :  { %446 = vperm.xlu0 %665, %v647_v33   ;;  %577 = vperm.xlu1 %666, %v661_v34  }
  0x4c   :  { %515 = vperm.xlu2 %667, %v656_v35  }
  0x53   :  { %586 = vperm.xlu0 %665, %v662_v36   ;;  %547 = vperm.xlu1 %666, %v659_v37  }
  0x5e   :  { %v58_v42 = vpop.permute.xlu2 %57 }
  0x5f   :  { %v78_v52 = vmul.f32 %v933_v44, %v58_v42 }
  0x66   :  { %v145_v55 = vpop.permute.xlu2 %144 }
  0x6e   :  { %v186_v11 = vpop.permute.xlu2 %185 }
  0x75   :  { %v73_v39 = vpop.permute.xlu0 %72  ;;  %v63_v40 = vpop.permute.xlu1 %62 }
  0x76   :  { %v79_v48 = vmul.f32 %v933_v44, %v63_v40  ;;  %v81_v49 = vmul.f32 %v933_v44, %v73_v39  ;;  %v171_v18 = vpop.permute.xlu2 %170 }
  0x7d   :  { %v68_v45 = vpop.permute.xlu0 %67  ;;  %v150_v46 = vpop.permute.xlu1 %149 }
  0x7e   :  { %v80_v47 = vmul.f32 %v933_v44, %v68_v45  ;;  %v306_v28 = vpop.permute.xlu2 %305 }
  0x7f   :  { %v308_v31 = vmul.f32 %v933_v44, %v306_v28 }
  0x81   :  { %v116_v38 = vpop.f32.mrf.mxu0 }
  0x82   :  { %v117_v60 = vadd.f32 %v116_v38, %v78_v52 }
  0x85   :  { %v140_v58 = vpop.permute.xlu0 %139  ;;  %v135_v59 = vpop.permute.xlu1 %134 }
  0x86   :  { %v152_v62 = vadd.f32 %v135_v59, %v117_v60 }
  0x89   :  { %v119_v41 = vpop.f32.mrf.mxu0 }
  0x8a   :  { %v120_v53 = vadd.f32 %v119_v41, %v79_v48  ;;  %v626_v48 = vld [vmem:[%s1024_s2 + $0x20] sm:$0xff] }
  0x8c   :  { %v153_v61 = vadd.f32 %v140_v58, %v120_v53 }
  0x8d   :  { %v181_v12 = vpop.permute.xlu0 %180  ;;  %v176_v16 = vpop.permute.xlu1 %175 }
  0x91   :  { %v122_v43 = vpop.f32.mrf.mxu0 }
  0x92   :  { %v123_v50 = vadd.f32 %v122_v43, %v80_v47 }
  0x94   :  { %v154_v56 = vadd.f32 %v145_v55, %v123_v50  ;;  %v628_v50 = vld [vmem:[%s1024_s2 + $0x30] sm:$0xff]  ;;  %v345_v55 = vpop.permute.xlu2 %344 }
  0x95   :  { %v298_v26 = vpop.permute.xlu0 %297  ;;  %v239_v29 = vpop.permute.xlu1 %238  ;;  %v354_v60 = vmul.f32 %v933_v44, %v345_v55 }
  0x96   :  { %v300_v27 = vmul.f32 %v933_v44, %v298_v26 }
  0x99   :  { %v125_v51 = vpop.f32.mrf.mxu0 }
  0x9a   :  { %v126_v54 = vadd.f32 %v125_v51, %v81_v49  ;;  %v627_v49 = vld [vmem:[%s1024_s2 + $0x28] sm:$0xff]  ;;  %v629_v51 = vld [vmem:[%s1024_s2 + $0x38] sm:$0xff] }
  0x9c   :  { %v155_v57 = vadd.f32 %v150_v46, %v126_v54  ;;  %v335_v59 = vpop.permute.xlu2 %334 }
  0x9d   :  { %v269_v37 = vpop.permute.xlu0 %268  ;;  %v350_v53 = vpop.permute.xlu1 %349 }
  0x9e   :  { %669 = vtanh.f32 %v155_v57 }
  0x9f   :  { %671 = vtanh.f32 %v154_v56 }
  0xa0   :  { %673 = vtanh.f32 %v153_v61  ;;  %v355_v61 = vmul.f32 %v933_v44, %v350_v53 }
  0xa1   :  { %675 = vtanh.f32 %v152_v62 }
  0xa4   :  { %v670_v63 = vpop.eup %669 }
  0xa5   :  { %213 = vmatpush.msra.mxu1 %v670_v63  ;;  %v672_v1 = vpop.eup %671  ;;  %v340_v56 = vpop.permute.xlu0 %339 }
  0xa6   :  { %v674_v2 = vpop.eup %673  ;;  %v424_v58 = vpop.permute.xlu1 %423  ;;  %v353_v62 = vmul.f32 %v933_v44, %v340_v56 }
  0xa7   :  { %214 = vmatpush.msra.mxu1 %v672_v1  ;;  %v676_v4 = vpop.eup %675 }
  0xa9   :  { %215 = vmatpush.msra.mxu1 %v674_v2  ;;  %v352_v2 = vmul.f32 %v933_v44, %v335_v59 }
  0xab   :  { %216 = vmatpush.msra.mxu1 %v676_v4 }
  0xac   :  { %620 = vmatmul.msk.f32.vlgmr.msra.gmra.mxu1 %vm188_vm2, %v160_v3 }
  0xb4   :  { %621 = vmatmul.msk.f32.gmra.mxu1 %vm188_vm2, %v161_v5  ;;  %v419_v5 = vpop.permute.xlu0 %418 }
  0xbc   :  { %622 = vmatmul.msk.f32.gmra.mxu1 %vm188_vm2, %v162_v6 }
  0xc4   :  { %623 = vmatmul.msk.f32.gmra.mxu1 %vm188_vm2, %v163_v7 }
 0x129   :  { %v218_v8 = vpop.f32.mrf.mxu1 }
 0x12a   :  { %v219_v19 = vadd.f32 %v218_v8, %v171_v18  ;;  %v644_v18 = vld [vmem:[%s1027_s5 + $0x28] sm:$0xff] }
 0x131   :  { %v221_v9 = vpop.f32.mrf.mxu1 }
 0x132   :  { %v222_v17 = vadd.f32 %v221_v9, %v176_v16  ;;  %v414_v9 = vpop.permute.xlu1 %413  ;;  %v643_v16 = vld [vmem:[%s1027_s5 + $0x20] sm:$0xff] }
 0x139   :  { %v224_v10 = vpop.f32.mrf.mxu1 }
 0x13a   :  { %v225_v14 = vadd.f32 %v224_v10, %v181_v12 }
 0x141   :  { %v227_v13 = vpop.f32.mrf.mxu1 }
 0x142   :  { %v228_v15 = vadd.f32 %v227_v13, %v186_v11  ;;  %v409_v11 = vpop.permute.xlu2 %408 }
 0x144   :  { %677 = vtanh.f32 %v228_v15 }
 0x145   :  { %679 = vtanh.f32 %v225_v14 }
 0x146   :  { %681 = vtanh.f32 %v222_v17 }
 0x147   :  { %683 = vtanh.f32 %v219_v19  ;;  %v645_v19 = vld [vmem:[%s1027_s5 + $0x30] sm:$0xff] }
 0x148   :  { %685 = vtanh.f32 %v300_v27 }
 0x149   :  { %687 = vtanh.f32 %v308_v31 }
 0x14a   :  { %v678_v20 = vpop.eup %677 }
 0x14b   :  { %256 = vmatpush.msra.mxu2 %v678_v20  ;;  %286 = vmatpush.msra.mxu3 %v678_v20  ;;  %v680_v21 = vpop.eup %679  ;;  %v646_v20 = vld [vmem:[%s1027_s5 + $0x38] sm:$0xff] }
 0x14c   :  { %v682_v22 = vpop.eup %681 }
 0x14d   :  { %257 = vmatpush.msra.mxu2 %v680_v21  ;;  %287 = vmatpush.msra.mxu3 %v680_v21  ;;  %v684_v25 = vpop.eup %683 }
 0x14e   :  { %v686_v33 = vpop.eup %685 }
 0x14f   :  { %258 = vmatpush.msra.mxu2 %v682_v22  ;;  %288 = vmatpush.msra.mxu3 %v682_v22  ;;  %v688_v39 = vpop.eup %687 }
 0x151   :  { %259 = vmatpush.msra.mxu2 %v684_v25  ;;  %289 = vmatpush.msra.mxu3 %v684_v25  ;;  %v457_v25 = vpop.permute.xlu1 %456 }
 0x152   :  { %624 = vmatmul.msk.f32.vlgmr.msra.gmra.mxu2 %vm188_vm2, %v234_v23  ;;  %625 = vmatmul.msk.f32.vlgmr.msra.gmra.mxu3 %vm188_vm2, %v264_v24  ;;  %v462_v24 = vpop.permute.xlu0 %461 }
 0x15a   :  { %v447_v31 = vpop.permute.xlu0 %446 }
 0x1d5   :  { %v261_v30 = vpop.f32.mrf.mxu2  ;;  %v291_v36 = vpop.f32.mrf.mxu3 }
 0x1d6   :  { %v262_v32 = vadd.f32 %v261_v30, %v239_v29  ;;  %v292_v38 = vadd.f32 %v291_v36, %v269_v37  ;;  %v452_v29 = vpop.permute.xlu2 %451  ;;  %v655_v36 = vld [vmem:[%s1029_s7 + $0x2] sm:$0x3]  ;;  %s740_s7 = smov [#allocation2]  }
 0x1d7   :  { %v658_v37 = vld [vmem:[%s1031_s9 + $0x2] sm:$0x3]  ;;  %s604_s9 = sshll.u32 %s740_s7, 4  ;;  %s605_s9 = int_to_ptr.vmem [resolvable:$true] %s604_s9 }
 0x1d8   :  { %v310_v34 = vmul.f32 %v686_v33, %v262_v32  ;;  %v313_v40 = vmul.f32 %v688_v39, %v292_v38  ;;  %v578_v39 = vpop.permute.xlu1 %577 }
 0x1da   :  { %v311_v35 = vmul.f32 1.442695, %v310_v34  ;;  %v319_v45 = vrot.slane %v313_v40, 6  ;;  %v580_v40 = vmul.f32 %v933_v44, %v578_v39 }
 0x1dc   :  { %689 = vpow2.f32 %v311_v35 }
 0x1e2   :  { %v690_v41 = vpop.eup %689 }
 0x1e3   :  { %v315_v42 = vrot.slane %v690_v41, 6  ;;  %v587_v41 = vpop.permute.xlu0 %586 }
 0x1e5   :  { %v317_v43 = vmul.f32 %v315_v42, %v814_v0  ;;  %v516_v42 = vpop.permute.xlu2 %515 }
 0x1e7   :  { %v966_v46 = vadd.f32 %v319_v45, %v317_v43 }
 0x1e9   :  { %v357_v47 = vrot.slane %v966_v46, 2 }
 0x1eb   :  { %634 = vmatpush.msk.msrb.mxu2 %vm95_vm0, %v357_v47 }
 0x1ec   :  { %635 = vmatmul.msk.f32.vlgmr.msrb.gmra.mxu2 %vm82_vm1, %v626_v48  ;;  %v589_v48 = vmul.f32 %v933_v44, %v587_v41 }
 0x1f4   :  { %636 = vmatmul.msk.f32.gmra.mxu2 %vm82_vm1, %v627_v49 }
 0x1fc   :  { %637 = vmatmul.msk.f32.gmra.mxu2 %vm82_vm1, %v628_v50 }
 0x204   :  { %638 = vmatmul.msk.f32.gmra.mxu2 %vm82_vm1, %v629_v51 }
 0x26f   :  { %v389_v52 = vpop.f32.mrf.mxu2 }
 0x270   :  { %v390_v6 = vadd.f32 %v389_v52, %v352_v2  ;;  %v548_v52 = vpop.permute.xlu1 %547 }
 0x272   :  { %v426_v12 = vadd.f32 %v409_v11, %v390_v6 }
 0x277   :  { %v392_v54 = vpop.f32.mrf.mxu2 }
 0x278   :  { %v393_v3 = vadd.f32 %v392_v54, %v353_v62 }
 0x27a   :  { %v427_v10 = vadd.f32 %v414_v9, %v393_v3 }
 0x27f   :  { %v395_v57 = vpop.f32.mrf.mxu2 }
 0x280   :  { %v396_v63 = vadd.f32 %v395_v57, %v354_v60 }
 0x282   :  { %v428_v7 = vadd.f32 %v419_v5, %v396_v63 }
 0x287   :  { %v398_v1 = vpop.f32.mrf.mxu2 }
 0x288   :  { %v399_v4 = vadd.f32 %v398_v1, %v355_v61 }
 0x28a   :  { %v429_v8 = vadd.f32 %v424_v58, %v399_v4 }
 0x28c   :  { %691 = vtanh.f32 %v429_v8 }
 0x28d   :  { %693 = vtanh.f32 %v428_v7 }
 0x28e   :  { %695 = vtanh.f32 %v427_v10 }
 0x28f   :  { %697 = vtanh.f32 %v426_v12 }
 0x292   :  { %v692_v13 = vpop.eup %691 }
 0x293   :  { %488 = vmatpush.msrb.mxu3 %v692_v13  ;;  %v694_v14 = vpop.eup %693 }
 0x294   :  { %v696_v15 = vpop.eup %695 }
 0x295   :  { %489 = vmatpush.msrb.mxu3 %v694_v14  ;;  %v698_v17 = vpop.eup %697 }
 0x297   :  { %490 = vmatpush.msrb.mxu3 %v696_v15 }
 0x299   :  { %491 = vmatpush.msrb.mxu3 %v698_v17 }
 0x29a   :  { %651 = vmatmul.msk.f32.vlgmr.msrb.gmra.mxu3 %vm188_vm2, %v643_v16 }
 0x2a2   :  { %652 = vmatmul.msk.f32.gmra.mxu3 %vm188_vm2, %v644_v18 }
 0x2aa   :  { %653 = vmatmul.msk.f32.gmra.mxu3 %vm188_vm2, %v645_v19 }
 0x2b2   :  { %654 = vmatmul.msk.f32.gmra.mxu3 %vm188_vm2, %v646_v20 }
 0x31d   :  { %v493_v21 = vpop.f32.mrf.mxu3 }
 0x31e   :  { %v494_v32 = vadd.f32 %v493_v21, %v447_v31 }
 0x325   :  { %v496_v22 = vpop.f32.mrf.mxu3 }
 0x326   :  { %v497_v30 = vadd.f32 %v496_v22, %v452_v29 }
 0x32d   :  { %v499_v23 = vpop.f32.mrf.mxu3 }
 0x32e   :  { %v500_v27 = vadd.f32 %v499_v23, %v457_v25 }
 0x335   :  { %v502_v26 = vpop.f32.mrf.mxu3 }
 0x336   :  { %v503_v28 = vadd.f32 %v502_v26, %v462_v24 }
 0x338   :  { %699 = vtanh.f32 %v503_v28 }
 0x339   :  { %701 = vtanh.f32 %v500_v27 }
 0x33a   :  { %703 = vtanh.f32 %v497_v30 }
 0x33b   :  { %705 = vtanh.f32 %v494_v32 }
 0x33c   :  { %707 = vtanh.f32 %v580_v40 }
 0x33d   :  { %709 = vtanh.f32 %v589_v48 }
 0x33e   :  { %v700_v33 = vpop.eup %699 }
 0x33f   :  { %533 = vmatpush.msrb.mxu0 %v700_v33  ;;  %565 = vmatpush.msrb.mxu1 %v700_v33  ;;  %v702_v34 = vpop.eup %701 }
 0x340   :  { %v704_v35 = vpop.eup %703 }
 0x341   :  { %534 = vmatpush.msrb.mxu0 %v702_v34  ;;  %566 = vmatpush.msrb.mxu1 %v702_v34  ;;  %v706_v38 = vpop.eup %705 }
 0x342   :  { %v708_v47 = vpop.eup %707 }
 0x343   :  { %535 = vmatpush.msrb.mxu0 %v704_v35  ;;  %567 = vmatpush.msrb.mxu1 %v704_v35  ;;  %v710_v54 = vpop.eup %709 }
 0x345   :  { %536 = vmatpush.msrb.mxu0 %v706_v38  ;;  %568 = vmatpush.msrb.mxu1 %v706_v38 }
 0x346   :  { %657 = vmatmul.msk.f32.vlgmr.msrb.gmra.mxu0 %vm188_vm2, %v655_v36  ;;  %660 = vmatmul.msk.f32.vlgmr.msrb.gmra.mxu1 %vm188_vm2, %v658_v37 }
 0x3c3   :  { %v538_v43 = vpop.f32.mrf.mxu0  ;;  %v570_v51 = vpop.f32.mrf.mxu1 }
 0x3c4   :  { %v539_v45 = vadd.f32 %v538_v43, %v516_v42  ;;  %v571_v53 = vadd.f32 %v570_v51, %v548_v52 }
 0x3c6   :  { %v591_v49 = vmul.f32 %v708_v47, %v539_v45  ;;  %v594_v56 = vmul.f32 %v710_v54, %v571_v53 }
 0x3c8   :  { %v592_v50 = vmul.f32 1.442695, %v591_v49 }
 0x3ca   :  { %711 = vpow2.f32 %v592_v50 }
 0x3d0   :  { %v712_v55 = vpop.eup %711 }
 0x3d1   :  { %v595_v57 = vmul.f32 %v712_v55, %v814_v0 }
 0x3d3   :  { %v596_v58 = vadd.f32 %v595_v57, %v594_v56 }
 0x3d5   :  { %v597_v44 = vsel %vm95_vm0, %v596_v58, %v966_v46 }
 0x3d6   :  { %598 = vst [vmem:[#allocation2] sm:$0xf] %v597_v44 }
 0x3d7   :  { %609 = dma.vmem_to_hbm [thread:$0]  %s605_s9, 64, %s607_s27, [#allocation3]  }
 0x3d8   :  { %737 = dma.done.wait [#allocation3], 64  }
 0x3d9   :  { %738 = vsyncadd [#allocation3], 4294967232 }
 0x3da   :  { %614 = vsyncpa [#allocation3], 1 }

// kernel: tpu_custom_call.1
= control target key start
LH: loop header
LB: loop body
LE: loop exit
PB: predicated region body
PF: predicated region fallthrough
CT: control target
= control target key end

     0   :  { %vm95_vm0 = vcmask 1041408   ;;  %v739_v3 = vmov 0   ;;  %vm82_vm1 = vcmask 15360   ;;  %s1022_s0 = inlined_call_operand.vmem [shape: f32[4,128], index: 0, kind: input, shape index: {}]   ;;  %s1023_s1 = inlined_call_operand.vmem [shape: f32[1,128], index: 1, kind: input, shape index: {}]   ;;  %s1024_s2 = inlined_call_operand.vmem [shape: f32[2,32,2], index: 2, kind: input, shape index: {}]   ;;  %s1025_s3 = inlined_call_operand.vmem [shape: f32[2,32,1], index: 3, kind: input, shape index: {}]   ;;  %s1026_s4 = inlined_call_operand.vmem [shape: f32[2,32,1], index: 4, kind: input, shape index: {}]   ;;  %s1027_s5 = inlined_call_operand.vmem [shape: f32[2,32,32], index: 5, kind: input, shape index: {}]   ;;  %s1028_s6 = inlined_call_operand.vmem [shape: f32[2,32,1], index: 6, kind: input, shape index: {}]   ;;  %s1029_s7 = inlined_call_operand.vmem [shape: f32[2,2,32], index: 7, kind: input, shape index: {}]   ;;  %s1030_s8 = inlined_call_operand.vmem [shape: f32[2,2,1], index: 8, kind: input, shape index: {}]   ;;  %s1031_s9 = inlined_call_operand.vmem [shape: f32[2,2,32], index: 9, kind: input, shape index: {}]   ;;  %s1032_s10 = inlined_call_operand.vmem [shape: f32[2,2,1], index: 10, kind: input, shape index: {}]   ;;  %s1033_s11 = inlined_call_operand.vmem [shape: f32[2,2,1], index: 11, kind: input, shape index: {}]   ;;  %s1034_s12 = inlined_call_operand.vmem [shape: f32[2,2,1], index: 12, kind: input, shape index: {}]   ;;  %s1035_s13 = inlined_call_operand.hbm [shape: f32[4,128], index: 13, kind: output, shape index: {}]  }
   0x1   :  { %v814_v0 = vld [vmem:[%s1022_s0] sm:$0xf]  ;;  %v54_v1 = vld [vmem:[%s1025_s3 + $0x18] sm:$0xff]  ;;  %v52_v2 = vld [vmem:[%s1025_s3 + $0x8] sm:$0xff]  ;;  %667 = vset.pattern.permute.xlu2 %v739_v3  ;;  %666 = vset.pattern.permute.xlu1 %v739_v3 }
   0x2   :  { %v51_v4 = vld [vmem:[%s1025_s3] sm:$0xff]  ;;  %665 = vset.pattern.permute.xlu0 %v739_v3  ;;  %615 = vmatpush.msk.msra.mxu0 %vm95_vm0, %v814_v0 }
   0x3   :  { %v47_v5 = vld [vmem:[%s1024_s2] sm:$0xff]  ;;  %72 = vperm.xlu0 %665, %v54_v1   ;;  %62 = vperm.xlu1 %666, %v52_v2  }
   0x4   :  { %57 = vperm.xlu2 %667, %v51_v4   ;;  %616 = vmatmul.msk.f32.vlgmr.msra.gmra.mxu0 %vm82_vm1, %v47_v5 }
   0x5   :  { %18 = vsyncpa [#allocation3], 0  ;;  %v53_v6 = vld [vmem:[%s1025_s3 + $0x10] sm:$0xff]  ;;  %v131_v7 = vld [vmem:[%s1026_s4 + $0x18] sm:$0xff]  ;;  %vm188_vm2 = vcmask 261120   ;;  %s606_s27 = sshll.u32 %s1035_s13, 4  ;;  %s607_s27 = int_to_ptr.hbm [resolvable:$true] %s606_s27 }
   0x6   :  { %v130_v8 = vld [vmem:[%s1026_s4 + $0x10] sm:$0xff]  ;;  %v48_v9 = vld [vmem:[%s1024_s2 + $0x8] sm:$0xff]  ;;  %v128_v11 = vld [vmem:[%s1026_s4] sm:$0xff] }
   0x7   :  { %v129_v10 = vld [vmem:[%s1026_s4 + $0x8] sm:$0xff]  ;;  %v167_v12 = vld [vmem:[%s1028_s6 + $0x18] sm:$0xff]  ;;  %v49_v13 = vld [vmem:[%s1024_s2 + $0x10] sm:$0xff] }
   0x8   :  { %v166_v14 = vld [vmem:[%s1028_s6 + $0x10] sm:$0xff]  ;;  %v165_v15 = vld [vmem:[%s1028_s6 + $0x8] sm:$0xff]  ;;  %v164_v16 = vld [vmem:[%s1028_s6] sm:$0xff] }
   0x9   :  { %v50_v17 = vld [vmem:[%s1024_s2 + $0x18] sm:$0xff]  ;;  %v294_v18 = vld [vmem:[%s1033_s11] sm:$0x3]  ;;  %v632_v23 = vld [vmem:[%s1025_s3 + $0x30] sm:$0xff] }
   0xa   :  { %v235_v19 = vld [vmem:[%s1030_s8] sm:$0x3]  ;;  %v633_v22 = vld [vmem:[%s1025_s3 + $0x38] sm:$0xff]  ;;  %v631_v24 = vld [vmem:[%s1025_s3 + $0x28] sm:$0xff] }
   0xb   :  { %67 = vperm.xlu0 %665, %v53_v6   ;;  %149 = vperm.xlu1 %666, %v131_v7   ;;  %v302_v20 = vld [vmem:[%s1034_s12] sm:$0x3]  ;;  %v642_v25 = vld [vmem:[%s1026_s4 + $0x38] sm:$0xff]  ;;  %v641_v27 = vld [vmem:[%s1026_s4 + $0x30] sm:$0xff] }
   0xc   :  { %144 = vperm.xlu2 %667, %v130_v8   ;;  %617 = vmatmul.msk.f32.gmra.mxu0 %vm82_vm1, %v48_v9  ;;  %v265_v21 = vld [vmem:[%s1032_s10] sm:$0x3]  ;;  %v640_v28 = vld [vmem:[%s1026_s4 + $0x28] sm:$0xff]  ;;  %v650_v30 = vld [vmem:[%s1028_s6 + $0x38] sm:$0xff] }
   0xd   :  { %v630_v26 = vld [vmem:[%s1025_s3 + $0x20] sm:$0xff]  ;;  %v649_v31 = vld [vmem:[%s1028_s6 + $0x30] sm:$0xff]  ;;  %v648_v32 = vld [vmem:[%s1028_s6 + $0x28] sm:$0xff] }
   0xe   :  { %v639_v29 = vld [vmem:[%s1026_s4 + $0x20] sm:$0xff]  ;;  %v161_v5 = vld [vmem:[%s1027_s5 + $0x8] sm:$0xff]  ;;  %v162_v6 = vld [vmem:[%s1027_s5 + $0x10] sm:$0xff] }
   0xf   :  { %v647_v33 = vld [vmem:[%s1028_s6 + $0x20] sm:$0xff]  ;;  %v163_v7 = vld [vmem:[%s1027_s5 + $0x18] sm:$0xff] }
  0x10   :  { %v661_v34 = vld [vmem:[%s1033_s11 + $0x2] sm:$0x3]  ;;  %v933_v44 = vld [vmem:[%s1023_s1] ss:$0 sm:$0xff] }
  0x11   :  { %v656_v35 = vld [vmem:[%s1030_s8 + $0x2] sm:$0x3] }
  0x12   :  { %v662_v36 = vld [vmem:[%s1034_s12 + $0x2] sm:$0x3] }
  0x13   :  { %139 = vperm.xlu0 %665, %v129_v10   ;;  %134 = vperm.xlu1 %666, %v128_v11   ;;  %v659_v37 = vld [vmem:[%s1032_s10 + $0x2] sm:$0x3] }
  0x14   :  { %185 = vperm.xlu2 %667, %v167_v12   ;;  %618 = vmatmul.msk.f32.gmra.mxu0 %vm82_vm1, %v49_v13  ;;  %v160_v3 = vld [vmem:[%s1027_s5] sm:$0xff] }
  0x1b   :  { %180 = vperm.xlu0 %665, %v166_v14   ;;  %175 = vperm.xlu1 %666, %v165_v15  }
  0x1c   :  { %170 = vperm.xlu2 %667, %v164_v16   ;;  %619 = vmatmul.msk.f32.gmra.mxu0 %vm82_vm1, %v50_v17 }
  0x23   :  { %297 = vperm.xlu0 %665, %v294_v18   ;;  %238 = vperm.xlu1 %666, %v235_v19  }
  0x24   :  { %305 = vperm.xlu2 %667, %v302_v20  }
  0x2b   :  { %268 = vperm.xlu0 %665, %v265_v21   ;;  %349 = vperm.xlu1 %666, %v633_v22  }
  0x2c   :  { %344 = vperm.xlu2 %667, %v632_v23   ;;  %v234_v23 = vld [vmem:[%s1029_s7] sm:$0x3] }
  0x33   :  { %339 = vperm.xlu0 %665, %v631_v24   ;;  %423 = vperm.xlu1 %666, %v642_v25   ;;  %v264_v24 = vld [vmem:[%s1031_s9] sm:$0x3] }
  0x34   :  { %334 = vperm.xlu2 %667, %v630_v26  }
  0x3b   :  { %418 = vperm.xlu0 %665, %v641_v27   ;;  %413 = vperm.xlu1 %666, %v640_v28  }
  0x3c   :  { %408 = vperm.xlu2 %667, %v639_v29  }
  0x43   :  { %461 = vperm.xlu0 %665, %v650_v30   ;;  %456 = vperm.xlu1 %666, %v649_v31  }
  0x44   :  { %451 = vperm.xlu2 %667, %v648_v32  }
  0x4b   :  { %446 = vperm.xlu0 %665, %v647_v33   ;;  %577 = vperm.xlu1 %666, %v661_v34  }
  0x4c   :  { %515 = vperm.xlu2 %667, %v656_v35  }
  0x53   :  { %586 = vperm.xlu0 %665, %v662_v36   ;;  %547 = vperm.xlu1 %666, %v659_v37  }
  0x5e   :  { %v58_v42 = vpop.permute.xlu2 %57 }
  0x5f   :  { %v78_v52 = vmul.f32 %v933_v44, %v58_v42 }
  0x66   :  { %v145_v55 = vpop.permute.xlu2 %144 }
  0x6e   :  { %v186_v11 = vpop.permute.xlu2 %185 }
  0x75   :  { %v73_v39 = vpop.permute.xlu0 %72  ;;  %v63_v40 = vpop.permute.xlu1 %62 }
  0x76   :  { %v79_v48 = vmul.f32 %v933_v44, %v63_v40  ;;  %v81_v49 = vmul.f32 %v933_v44, %v73_v39  ;;  %v171_v18 = vpop.permute.xlu2 %170 }
  0x7d   :  { %v68_v45 = vpop.permute.xlu0 %67  ;;  %v150_v46 = vpop.permute.xlu1 %149 }
  0x7e   :  { %v80_v47 = vmul.f32 %v933_v44, %v68_v45  ;;  %v306_v28 = vpop.permute.xlu2 %305 }
  0x7f   :  { %v308_v31 = vmul.f32 %v933_v44, %v306_v28 }
  0x81   :  { %v116_v38 = vpop.f32.mrf.mxu0 }
  0x82   :  { %v117_v60 = vadd.f32 %v116_v38, %v78_v52 }
  0x85   :  { %v140_v58 = vpop.permute.xlu0 %139  ;;  %v135_v59 = vpop.permute.xlu1 %134 }
  0x86   :  { %v152_v62 = vadd.f32 %v135_v59, %v117_v60 }
  0x89   :  { %v119_v41 = vpop.f32.mrf.mxu0 }
  0x8a   :  { %v120_v53 = vadd.f32 %v119_v41, %v79_v48  ;;  %v626_v48 = vld [vmem:[%s1024_s2 + $0x20] sm:$0xff] }
  0x8c   :  { %v153_v61 = vadd.f32 %v140_v58, %v120_v53 }
  0x8d   :  { %v181_v12 = vpop.permute.xlu0 %180  ;;  %v176_v16 = vpop.permute.xlu1 %175 }
  0x91   :  { %v122_v43 = vpop.f32.mrf.mxu0 }
  0x92   :  { %v123_v50 = vadd.f32 %v122_v43, %v80_v47 }
  0x94   :  { %v154_v56 = vadd.f32 %v145_v55, %v123_v50  ;;  %v628_v50 = vld [vmem:[%s1024_s2 + $0x30] sm:$0xff]  ;;  %v345_v55 = vpop.permute.xlu2 %344 }
  0x95   :  { %v298_v26 = vpop.permute.xlu0 %297  ;;  %v239_v29 = vpop.permute.xlu1 %238  ;;  %v354_v60 = vmul.f32 %v933_v44, %v345_v55 }
  0x96   :  { %v300_v27 = vmul.f32 %v933_v44, %v298_v26 }
  0x99   :  { %v125_v51 = vpop.f32.mrf.mxu0 }
  0x9a   :  { %v126_v54 = vadd.f32 %v125_v51, %v81_v49  ;;  %v627_v49 = vld [vmem:[%s1024_s2 + $0x28] sm:$0xff]  ;;  %v629_v51 = vld [vmem:[%s1024_s2 + $0x38] sm:$0xff] }
  0x9c   :  { %v155_v57 = vadd.f32 %v150_v46, %v126_v54  ;;  %v335_v59 = vpop.permute.xlu2 %334 }
  0x9d   :  { %v269_v37 = vpop.permute.xlu0 %268  ;;  %v350_v53 = vpop.permute.xlu1 %349 }
  0x9e   :  { %669 = vtanh.f32 %v155_v57 }
  0x9f   :  { %671 = vtanh.f32 %v154_v56 }
  0xa0   :  { %673 = vtanh.f32 %v153_v61  ;;  %v355_v61 = vmul.f32 %v933_v44, %v350_v53 }
  0xa1   :  { %675 = vtanh.f32 %v152_v62 }
  0xa4   :  { %v670_v63 = vpop.eup %669 }
  0xa5   :  { %213 = vmatpush.msra.mxu1 %v670_v63  ;;  %v672_v1 = vpop.eup %671  ;;  %v340_v56 = vpop.permute.xlu0 %339 }
  0xa6   :  { %v674_v2 = vpop.eup %673  ;;  %v424_v58 = vpop.permute.xlu1 %423  ;;  %v353_v62 = vmul.f32 %v933_v44, %v340_v56 }
  0xa7   :  { %214 = vmatpush.msra.mxu1 %v672_v1  ;;  %v676_v4 = vpop.eup %675 }
  0xa9   :  { %215 = vmatpush.msra.mxu1 %v674_v2  ;;  %v352_v2 = vmul.f32 %v933_v44, %v335_v59 }
  0xab   :  { %216 = vmatpush.msra.mxu1 %v676_v4 }
  0xac   :  { %620 = vmatmul.msk.f32.vlgmr.msra.gmra.mxu1 %vm188_vm2, %v160_v3 }
  0xb4   :  { %621 = vmatmul.msk.f32.gmra.mxu1 %vm188_vm2, %v161_v5  ;;  %v419_v5 = vpop.permute.xlu0 %418 }
  0xbc   :  { %622 = vmatmul.msk.f32.gmra.mxu1 %vm188_vm2, %v162_v6 }
  0xc4   :  { %623 = vmatmul.msk.f32.gmra.mxu1 %vm188_vm2, %v163_v7 }
 0x129   :  { %v218_v8 = vpop.f32.mrf.mxu1 }
 0x12a   :  { %v219_v19 = vadd.f32 %v218_v8, %v171_v18  ;;  %v644_v18 = vld [vmem:[%s1027_s5 + $0x28] sm:$0xff] }
 0x131   :  { %v221_v9 = vpop.f32.mrf.mxu1 }
 0x132   :  { %v222_v17 = vadd.f32 %v221_v9, %v176_v16  ;;  %v414_v9 = vpop.permute.xlu1 %413  ;;  %v643_v16 = vld [vmem:[%s1027_s5 + $0x20] sm:$0xff] }
 0x139   :  { %v224_v10 = vpop.f32.mrf.mxu1 }
 0x13a   :  { %v225_v14 = vadd.f32 %v224_v10, %v181_v12 }
 0x141   :  { %v227_v13 = vpop.f32.mrf.mxu1 }
 0x142   :  { %v228_v15 = vadd.f32 %v227_v13, %v186_v11  ;;  %v409_v11 = vpop.permute.xlu2 %408 }
 0x144   :  { %677 = vtanh.f32 %v228_v15 }
 0x145   :  { %679 = vtanh.f32 %v225_v14 }
 0x146   :  { %681 = vtanh.f32 %v222_v17 }
 0x147   :  { %683 = vtanh.f32 %v219_v19  ;;  %v645_v19 = vld [vmem:[%s1027_s5 + $0x30] sm:$0xff] }
 0x148   :  { %685 = vtanh.f32 %v300_v27 }
 0x149   :  { %687 = vtanh.f32 %v308_v31 }
 0x14a   :  { %v678_v20 = vpop.eup %677 }
 0x14b   :  { %256 = vmatpush.msra.mxu2 %v678_v20  ;;  %286 = vmatpush.msra.mxu3 %v678_v20  ;;  %v680_v21 = vpop.eup %679  ;;  %v646_v20 = vld [vmem:[%s1027_s5 + $0x38] sm:$0xff] }
 0x14c   :  { %v682_v22 = vpop.eup %681 }
 0x14d   :  { %257 = vmatpush.msra.mxu2 %v680_v21  ;;  %287 = vmatpush.msra.mxu3 %v680_v21  ;;  %v684_v25 = vpop.eup %683 }
 0x14e   :  { %v686_v33 = vpop.eup %685 }
 0x14f   :  { %258 = vmatpush.msra.mxu2 %v682_v22  ;;  %288 = vmatpush.msra.mxu3 %v682_v22  ;;  %v688_v39 = vpop.eup %687 }
 0x151   :  { %259 = vmatpush.msra.mxu2 %v684_v25  ;;  %289 = vmatpush.msra.mxu3 %v684_v25  ;;  %v457_v25 = vpop.permute.xlu1 %456 }
 0x152   :  { %624 = vmatmul.msk.f32.vlgmr.msra.gmra.mxu2 %vm188_vm2, %v234_v23  ;;  %625 = vmatmul.msk.f32.vlgmr.msra.gmra.mxu3 %vm188_vm2, %v264_v24  ;;  %v462_v24 = vpop.permute.xlu0 %461 }
 0x15a   :  { %v447_v31 = vpop.permute.xlu0 %446 }
 0x1d5   :  { %v261_v30 = vpop.f32.mrf.mxu2  ;;  %v291_v36 = vpop.f32.mrf.mxu3 }
 0x1d6   :  { %v262_v32 = vadd.f32 %v261_v30, %v239_v29  ;;  %v292_v38 = vadd.f32 %v291_v36, %v269_v37  ;;  %v452_v29 = vpop.permute.xlu2 %451  ;;  %v655_v36 = vld [vmem:[%s1029_s7 + $0x2] sm:$0x3]  ;;  %s740_s7 = smov [#allocation2]  }
 0x1d7   :  { %v658_v37 = vld [vmem:[%s1031_s9 + $0x2] sm:$0x3]  ;;  %s604_s9 = sshll.u32 %s740_s7, 4  ;;  %s605_s9 = int_to_ptr.vmem [resolvable:$true] %s604_s9 }
 0x1d8   :  { %v310_v34 = vmul.f32 %v686_v33, %v262_v32  ;;  %v313_v40 = vmul.f32 %v688_v39, %v292_v38  ;;  %v578_v39 = vpop.permute.xlu1 %577 }
 0x1da   :  { %v311_v35 = vmul.f32 1.442695, %v310_v34  ;;  %v319_v45 = vrot.slane %v313_v40, 6  ;;  %v580_v40 = vmul.f32 %v933_v44, %v578_v39 }
 0x1dc   :  { %689 = vpow2.f32 %v311_v35 }
 0x1e2   :  { %v690_v41 = vpop.eup %689 }
 0x1e3   :  { %v315_v42 = vrot.slane %v690_v41, 6  ;;  %v587_v41 = vpop.permute.xlu0 %586 }
 0x1e5   :  { %v317_v43 = vmul.f32 %v315_v42, %v814_v0  ;;  %v516_v42 = vpop.permute.xlu2 %515 }
 0x1e7   :  { %v966_v46 = vadd.f32 %v319_v45, %v317_v43 }
 0x1e9   :  { %v357_v47 = vrot.slane %v966_v46, 2 }
 0x1eb   :  { %634 = vmatpush.msk.msrb.mxu2 %vm95_vm0, %v357_v47 }
 0x1ec   :  { %635 = vmatmul.msk.f32.vlgmr.msrb.gmra.mxu2 %vm82_vm1, %v626_v48  ;;  %v589_v48 = vmul.f32 %v933_v44, %v587_v41 }
 0x1f4   :  { %636 = vmatmul.msk.f32.gmra.mxu2 %vm82_vm1, %v627_v49 }
 0x1fc   :  { %637 = vmatmul.msk.f32.gmra.mxu2 %vm82_vm1, %v628_v50 }
 0x204   :  { %638 = vmatmul.msk.f32.gmra.mxu2 %vm82_vm1, %v629_v51 }
 0x26f   :  { %v389_v52 = vpop.f32.mrf.mxu2 }
 0x270   :  { %v390_v6 = vadd.f32 %v389_v52, %v352_v2  ;;  %v548_v52 = vpop.permute.xlu1 %547 }
 0x272   :  { %v426_v12 = vadd.f32 %v409_v11, %v390_v6 }
 0x277   :  { %v392_v54 = vpop.f32.mrf.mxu2 }
 0x278   :  { %v393_v3 = vadd.f32 %v392_v54, %v353_v62 }
 0x27a   :  { %v427_v10 = vadd.f32 %v414_v9, %v393_v3 }
 0x27f   :  { %v395_v57 = vpop.f32.mrf.mxu2 }
 0x280   :  { %v396_v63 = vadd.f32 %v395_v57, %v354_v60 }
 0x282   :  { %v428_v7 = vadd.f32 %v419_v5, %v396_v63 }
 0x287   :  { %v398_v1 = vpop.f32.mrf.mxu2 }
 0x288   :  { %v399_v4 = vadd.f32 %v398_v1, %v355_v61 }
 0x28a   :  { %v429_v8 = vadd.f32 %v424_v58, %v399_v4 }
 0x28c   :  { %691 = vtanh.f32 %v429_v8 }
 0x28d   :  { %693 = vtanh.f32 %v428_v7 }
 0x28e   :  { %695 = vtanh.f32 %v427_v10 }
 0x28f   :  { %697 = vtanh.f32 %v426_v12 }
 0x292   :  { %v692_v13 = vpop.eup %691 }
 0x293   :  { %488 = vmatpush.msrb.mxu3 %v692_v13  ;;  %v694_v14 = vpop.eup %693 }
 0x294   :  { %v696_v15 = vpop.eup %695 }
 0x295   :  { %489 = vmatpush.msrb.mxu3 %v694_v14  ;;  %v698_v17 = vpop.eup %697 }
 0x297   :  { %490 = vmatpush.msrb.mxu3 %v696_v15 }
 0x299   :  { %491 = vmatpush.msrb.mxu3 %v698_v17 }
 0x29a   :  { %651 = vmatmul.msk.f32.vlgmr.msrb.gmra.mxu3 %vm188_vm2, %v643_v16 }
 0x2a2   :  { %652 = vmatmul.msk.f32.gmra.mxu3 %vm188_vm2, %v644_v18 }
 0x2aa   :  { %653 = vmatmul.msk.f32.gmra.mxu3 %vm188_vm2, %v645_v19 }
 0x2b2   :  { %654 = vmatmul.msk.f32.gmra.mxu3 %vm188_vm2, %v646_v20 }
 0x31d   :  { %v493_v21 = vpop.f32.mrf.mxu3 }
 0x31e   :  { %v494_v32 = vadd.f32 %v493_v21, %v447_v31 }
 0x325   :  { %v496_v22 = vpop.f32.mrf.mxu3 }
 0x326   :  { %v497_v30 = vadd.f32 %v496_v22, %v452_v29 }
 0x32d   :  { %v499_v23 = vpop.f32.mrf.mxu3 }
 0x32e   :  { %v500_v27 = vadd.f32 %v499_v23, %v457_v25 }
 0x335   :  { %v502_v26 = vpop.f32.mrf.mxu3 }
 0x336   :  { %v503_v28 = vadd.f32 %v502_v26, %v462_v24 }
 0x338   :  { %699 = vtanh.f32 %v503_v28 }
 0x339   :  { %701 = vtanh.f32 %v500_v27 }
 0x33a   :  { %703 = vtanh.f32 %v497_v30 }
 0x33b   :  { %705 = vtanh.f32 %v494_v32 }
 0x33c   :  { %707 = vtanh.f32 %v580_v40 }
 0x33d   :  { %709 = vtanh.f32 %v589_v48 }
 0x33e   :  { %v700_v33 = vpop.eup %699 }
 0x33f   :  { %533 = vmatpush.msrb.mxu0 %v700_v33  ;;  %565 = vmatpush.msrb.mxu1 %v700_v33  ;;  %v702_v34 = vpop.eup %701 }
 0x340   :  { %v704_v35 = vpop.eup %703 }
 0x341   :  { %534 = vmatpush.msrb.mxu0 %v702_v34  ;;  %566 = vmatpush.msrb.mxu1 %v702_v34  ;;  %v706_v38 = vpop.eup %705 }
 0x342   :  { %v708_v47 = vpop.eup %707 }
 0x343   :  { %535 = vmatpush.msrb.mxu0 %v704_v35  ;;  %567 = vmatpush.msrb.mxu1 %v704_v35  ;;  %v710_v54 = vpop.eup %709 }
 0x345   :  { %536 = vmatpush.msrb.mxu0 %v706_v38  ;;  %568 = vmatpush.msrb.mxu1 %v706_v38 }
 0x346   :  { %657 = vmatmul.msk.f32.vlgmr.msrb.gmra.mxu0 %vm188_vm2, %v655_v36  ;;  %660 = vmatmul.msk.f32.vlgmr.msrb.gmra.mxu1 %vm188_vm2, %v658_v37 }
 0x3c3   :  { %v538_v43 = vpop.f32.mrf.mxu0  ;;  %v570_v51 = vpop.f32.mrf.mxu1 }
 0x3c4   :  { %v539_v45 = vadd.f32 %v538_v43, %v516_v42  ;;  %v571_v53 = vadd.f32 %v570_v51, %v548_v52 }
 0x3c6   :  { %v591_v49 = vmul.f32 %v708_v47, %v539_v45  ;;  %v594_v56 = vmul.f32 %v710_v54, %v571_v53 }
 0x3c8   :  { %v592_v50 = vmul.f32 1.442695, %v591_v49 }
 0x3ca   :  { %711 = vpow2.f32 %v592_v50 }
 0x3d0   :  { %v712_v55 = vpop.eup %711 }
 0x3d1   :  { %v595_v57 = vmul.f32 %v712_v55, %v814_v0 }
 0x3d3   :  { %v596_v58 = vadd.f32 %v595_v57, %v594_v56 }
 0x3d5   :  { %v597_v44 = vsel %vm95_vm0, %v596_v58, %v966_v46 }
 0x3d6   :  { %598 = vst [vmem:[#allocation2] sm:$0xf] %v597_v44 }
 0x3d7   :  { %609 = dma.vmem_to_hbm [thread:$0]  %s605_s9, 64, %s607_s27, [#allocation3]  }
 0x3d8   :  { %737 = dma.done.wait [#allocation3], 64  }
 0x3d9   :  { %738 = vsyncadd [#allocation3], 4294967232 }
 0x3da   :  { %614 = vsyncpa [#allocation3], 1 }

</bundles_post_ra>
